<compile_context>
chip_gen: v5e
topology: v5e:2x2
jax: 0.10.0
libtpu: 0.0.40
codegen_flags: <defaults>
</compile_context>

<pallas_src>
import functools

import jax
import jax.numpy as jnp
from jax import lax
from jax.experimental import pallas as pl
from jax.experimental.pallas import tpu as pltpu

BAG_BLOCK = 8   # bags per grid step  -> dense (8, Hp) output stores
N_SLOTS = 8     # HBM-gather path: row-DMA pipeline depth (7 copies in flight)


# --------------------------------------------------------------------------
# Path 1: folded table resident in VMEM (small / medium vocabularies).
# --------------------------------------------------------------------------
def _bow_vmem_table_kernel(ids_ref,      # (Bp, L) int32  SMEM (scalar prefetch)
                           inv_len_ref,  # (Bp,)   f32    SMEM
                           bias_ref,     # (1, Hp) f32    VMEM
                           table_ref,    # (V, 1, Hp)     VMEM, grid-resident
                           o_ref):       # (BAG_BLOCK, Hp) f32 VMEM output block
    BB, Hp = o_ref.shape
    L = ids_ref.shape[1]
    bbase = pl.program_id(0) * BB

    # Register accumulators (fori_loop carry), one per bag in this block.
    def body(l, accs):
        return tuple(
            accs[j] + table_ref[ids_ref[bbase + j, l]].astype(jnp.float32)
            for j in range(BB))

    init = tuple(jnp.zeros((1, Hp), jnp.float32) for _ in range(BB))
    # Pad tokens hit the zeroed padding row, so summing the full L is exact;
    # unroll when L is small so the scheduler can interleave the gathers.
    accs = lax.fori_loop(0, L, body, init, unroll=(L <= 32))

    rows = [accs[j] * inv_len_ref[bbase + j] for j in range(BB)]
    o_ref[...] = jnp.concatenate(rows, axis=0) + bias_ref[...]


# --------------------------------------------------------------------------
# Path 2: folded table stays in HBM, deep-pipelined per-row DMA gather.
# --------------------------------------------------------------------------
def _bow_hbm_gather_kernel(ids_ref,      # (Bp, L) int32  SMEM (scalar prefetch)
                           len_ref,      # (Bp,)   int32  SMEM
                           inv_len_ref,  # (Bp,)   f32    SMEM
                           bias_ref,     # (1, Hp) f32    VMEM
                           table_hbm,    # (V, 1, Hp)     HBM (pl.ANY)
                           o_ref,        # (BAG_BLOCK, Hp) f32 VMEM output block
                           row_buf,      # (N_SLOTS, 1, Hp) VMEM scratch
                           sem):         # (N_SLOTS,) DMA semaphores
    BB, Hp = o_ref.shape
    NS = row_buf.shape[0]
    DIST = NS - 1                         # prefetch distance (7 copies in flight)
    bbase = pl.program_id(0) * BB

    rows = []
    for j in range(BB):                   # static unroll over the 8 bags
        b = bbase + j
        n = len_ref[b]                    # tail-skip: only gather real tokens

        def fetch(l):
            pltpu.make_async_copy(table_hbm.at[ids_ref[b, l]],
                                  row_buf.at[l % NS],
                                  sem.at[l % NS]).start()

        # Prime the pipeline with up to DIST row copies.
        @pl.loop(0, jnp.minimum(n, DIST))
        def _(l):
            fetch(l)

        def body(l, acc):
            slot = l % NS
            # Wait descriptor matches the started copy: (1, Hp) into
            # row_buf.at[slot] on sem.at[slot].
            pltpu.make_async_copy(table_hbm.at[0], row_buf.at[slot],
                                  sem.at[slot]).wait()
            acc = acc + row_buf[slot].astype(jnp.float32)   # read before refill

            # Refill the slot consumed LAST iteration (no WAR hazard here).
            @pl.when(l + DIST < n)
            def _():
                fetch(l + DIST)

            return acc

        acc = lax.fori_loop(0, n, body, jnp.zeros((1, Hp), jnp.float32))
        rows.append(acc * inv_len_ref[b])

    o_ref[...] = jnp.concatenate(rows, axis=0) + bias_ref[...]


# --------------------------------------------------------------------------
# Host-side helpers.
# --------------------------------------------------------------------------
def _vmem_capacity_bytes():
    try:
        return int(pltpu.get_tpu_info().vmem_capacity_bytes)
    except Exception:
        return 64 << 20    # conservative default (v7x per-core VMEM)


def fold_bow_table(emb_table, proj_w, padding_idx=None, dtype=jnp.float32):
    """Fold Embedding weight + Linear weight into one (V, 1, Hp) lookup table.

    Hoisted out of the forward pass: the O(V*D*H) fold runs once per weight
    update, so the Pallas kernel is the only per-step cost.  `dtype=bfloat16`
    halves HBM-gather bytes (accumulation stays f32)."""
    V, D = emb_table.shape
    H = proj_w.shape[0]
    Hp = pl.cdiv(H, 128) * 128
    emb = jnp.asarray(emb_table, jnp.float32)
    if padding_idx is not None:
        emb = emb.at[padding_idx].set(0.0)      # nn.Embedding(padding_idx=...)
    table = emb @ jnp.asarray(proj_w, jnp.float32).T          # (V, H)
    table = jnp.pad(table, ((0, 0), (0, Hp - H))).astype(dtype)
    return table.reshape(V, 1, Hp)


def bow_forward(ids, length, folded_table, proj_b, *, force_hbm_gather=False):
    """ids: (B, L) int; length: (B,) int; folded_table: (V, 1, Hp) from
    fold_bow_table; proj_b: (H,).  Returns (B, H) float32."""
    V, _, Hp = folded_table.shape
    B, L = ids.shape
    H = proj_b.shape[0]

    # Bag-block the batch: pad to a multiple of BAG_BLOCK.
    Bp = pl.cdiv(B, BAG_BLOCK) * BAG_BLOCK
    pad_b = Bp - B
    ids32 = jnp.pad(ids.astype(jnp.int32), ((0, pad_b), (0, 0)))
    len32 = jnp.pad(length.astype(jnp.int32), (0, pad_b))            # pads -> 0
    inv_len = jnp.pad(1.0 / length.astype(jnp.float32), (0, pad_b))  # pads -> 0
    bias = jnp.pad(jnp.asarray(proj_b, jnp.float32), (0, Hp - H)).reshape(1, Hp)

    grid = (Bp // BAG_BLOCK,)
    out_shape = jax.ShapeDtypeStruct((Bp, Hp), jnp.float32)
    out_spec = pl.BlockSpec((BAG_BLOCK, Hp), lambda i, ids: (i, 0))
    bias_spec = pl.BlockSpec((1, Hp), lambda i, ids: (0, 0))

    # Generation-aware dispatch: the (V,1,Hp) VMEM layout pads each row to 8
    # sublanes, so the resident copy costs V * 8 * Hp * itemsize bytes.
    table_vmem_bytes = V * 8 * Hp * folded_table.dtype.itemsize
    budget = _vmem_capacity_bytes() // 4    # ~16 MiB on v7x, ~32 MiB on v5e/v6e
    use_vmem_table = (not force_hbm_gather) and table_vmem_bytes <= budget

    cp_kwargs = dict(dimension_semantics=("parallel",))   # v7x: 2 TCs split bags
    if use_vmem_table and table_vmem_bytes > (8 << 20):
        cp_kwargs["vmem_limit_bytes"] = int(table_vmem_bytes + (8 << 20))

    if use_vmem_table:
        out = pl.pallas_call(
            _bow_vmem_table_kernel,
            out_shape=out_shape,
            grid_spec=pltpu.PrefetchScalarGridSpec(
                num_scalar_prefetch=1,                       # token ids -> SMEM
                grid=grid,
                in_specs=[
                    pl.BlockSpec(memory_space=pltpu.MemorySpace.SMEM),  # inv_len
                    bias_spec,
                    pl.BlockSpec((V, 1, Hp), lambda i, ids: (0, 0, 0)),  # resident
                ],
                out_specs=out_spec,
            ),
            compiler_params=pltpu.CompilerParams(**cp_kwargs),
        )(ids32, inv_len, bias, folded_table)
    else:
        out = pl.pallas_call(
            _bow_hbm_gather_kernel,
            out_shape=out_shape,
            grid_spec=pltpu.PrefetchScalarGridSpec(
                num_scalar_prefetch=1,                       # token ids -> SMEM
                grid=grid,
                in_specs=[
                    pl.BlockSpec(memory_space=pltpu.MemorySpace.SMEM),  # lengths
                    pl.BlockSpec(memory_space=pltpu.MemorySpace.SMEM),  # inv_len
                    bias_spec,
                    pl.BlockSpec(memory_space=pl.ANY),       # table stays in HBM
                ],
                out_specs=out_spec,
                scratch_shapes=[
                    pltpu.VMEM((N_SLOTS, 1, Hp), folded_table.dtype),
                    pltpu.SemaphoreType.DMA((N_SLOTS,)),
                ],
            ),
            compiler_params=pltpu.CompilerParams(**cp_kwargs),
        )(ids32, len32, inv_len, bias, folded_table)

    return out[:B, :H]


if __name__ == "__main__":
    # Small shapes consistent with the module's forward.
    B, L = 2, 8          # batch, max_length
    V, D = 20, 32        # vocab size, pretrained embedding dim (input_dims)
    H = 16               # hidden_dims
    PAD_IDX = 1

    key = jax.random.PRNGKey(0)
    k_emb, k_ids, k_w = jax.random.split(key, 3)

    # Deterministic "pretrained" embedding table; padding_idx row is zero.
    emb_table = jax.random.normal(k_emb, (V, D), dtype=jnp.float32)
    emb_table = emb_table.at[PAD_IDX].set(0.0)

    # Xavier-uniform projection weight (H, D), bias = 0 (like the module init).
    bound = (6.0 / (D + H)) ** 0.5
    proj_w = jax.random.uniform(k_w, (H, D), dtype=jnp.float32,
                                minval=-bound, maxval=bound)
    proj_b = jnp.zeros((H,), dtype=jnp.float32)

    # Token ids with padding at the tail, and matching lengths.
    length = jnp.array([6, 4], dtype=jnp.int32)
    ids = jax.random.randint(k_ids, (B, L), 0, V, dtype=jnp.int32)
    pos = jnp.arange(L)[None, :]
    ids = jnp.where(pos < length[:, None], ids, PAD_IDX)   # pad beyond length

    # Fold once (hoisted out of the forward).
    table = fold_bow_table(emb_table, proj_w, padding_idx=PAD_IDX)

    # Default dispatch (VMEM-resident table for this tiny vocabulary).
    out_vmem = jax.block_until_ready(bow_forward(ids, length, table, proj_b))
    # Also exercise the large-vocab HBM-gather path (deep DMA pipeline).
    out_hbm = jax.block_until_ready(
        bow_forward(ids, length, table, proj_b, force_hbm_gather=True))

    # Pure-JAX reference of the PyTorch forward (unfused order of operations).
    ref = (emb_table[ids].sum(axis=1) / length[:, None].astype(jnp.float32))
    ref = ref @ proj_w.T + proj_b

    assert out_vmem.shape == (B, H)
    assert jnp.allclose(out_vmem, ref, atol=1e-4, rtol=1e-4), "VMEM path mismatch"
    assert jnp.allclose(out_hbm, ref, atol=1e-4, rtol=1e-4), "HBM path mismatch"
    print("KERNEL_OK")
</pallas_src>

<mosaic_0001>
module attributes {stable_mosaic.version = 11 : i64} {
  func.func @_bow_vmem_table_kernel(%arg0: i32, %arg1: memref<8x8xi32, #tpu.memory_space<smem>>, %arg2: memref<8xf32, #tpu.memory_space<smem>>, %arg3: memref<1x128xf32, #tpu.memory_space<vmem>>, %arg4: memref<20x1x128xf32, #tpu.memory_space<vmem>>, %arg5: memref<8x128xf32, #tpu.memory_space<vmem>>) attributes {dimension_semantics = [#tpu.dimension_semantics<parallel>], iteration_bounds = array<i64: 1>, scalar_prefetch = 1 : i64, scratch_operands = 0 : i64, tpu.core_type = #tpu.core_type<tc>, window_params = [{transform_indices = @transform_0, window_bounds = array<i64: 8>}, {pipeline_mode = #tpu.pipeline_mode<synchronous>, transform_indices = @transform_1, window_bounds = array<i64: 1, 128>}, {pipeline_mode = #tpu.pipeline_mode<synchronous>, transform_indices = @transform_2, window_bounds = array<i64: 20, 1, 128>}, {transform_indices = @transform_3, window_bounds = array<i64: 8, 128>}]} {
    %c8_i32 = arith.constant 8 : i32
    %0 = arith.muli %arg0, %c8_i32 : i32
    %cst = arith.constant 0.000000e+00 : f32
    %1 = vector.broadcast %cst : f32 to vector<1x128xf32>
    %cst_0 = arith.constant 0.000000e+00 : f32
    %2 = vector.broadcast %cst_0 : f32 to vector<1x128xf32>
    %cst_1 = arith.constant 0.000000e+00 : f32
    %3 = vector.broadcast %cst_1 : f32 to vector<1x128xf32>
    %cst_2 = arith.constant 0.000000e+00 : f32
    %4 = vector.broadcast %cst_2 : f32 to vector<1x128xf32>
    %cst_3 = arith.constant 0.000000e+00 : f32
    %5 = vector.broadcast %cst_3 : f32 to vector<1x128xf32>
    %cst_4 = arith.constant 0.000000e+00 : f32
    %6 = vector.broadcast %cst_4 : f32 to vector<1x128xf32>
    %cst_5 = arith.constant 0.000000e+00 : f32
    %7 = vector.broadcast %cst_5 : f32 to vector<1x128xf32>
    %cst_6 = arith.constant 0.000000e+00 : f32
    %8 = vector.broadcast %cst_6 : f32 to vector<1x128xf32>
    %c0_i32 = arith.constant 0 : i32
    %c0_i32_7 = arith.constant 0 : i32
    %9 = arith.addi %0, %c0_i32_7 : i32
    %10 = arith.index_cast %9 : i32 to index
    %11 = arith.index_cast %c0_i32 : i32 to index
    %12 = memref.load %arg1[%10, %11] : memref<8x8xi32, #tpu.memory_space<smem>>
    %13 = arith.index_cast %12 : i32 to index
    %c0 = arith.constant 0 : index
    %c0_8 = arith.constant 0 : index
    %14 = vector.load %arg4[%13, %c0, %c0_8] : memref<20x1x128xf32, #tpu.memory_space<vmem>>, vector<1x1x128xf32>
    %15 = vector.shape_cast %14 : vector<1x1x128xf32> to vector<1x128xf32>
    %16 = arith.addf %1, %15 : vector<1x128xf32>
    %c1_i32 = arith.constant 1 : i32
    %17 = arith.addi %0, %c1_i32 : i32
    %18 = arith.index_cast %17 : i32 to index
    %19 = arith.index_cast %c0_i32 : i32 to index
    %20 = memref.load %arg1[%18, %19] : memref<8x8xi32, #tpu.memory_space<smem>>
    %21 = arith.index_cast %20 : i32 to index
    %c0_9 = arith.constant 0 : index
    %c0_10 = arith.constant 0 : index
    %22 = vector.load %arg4[%21, %c0_9, %c0_10] : memref<20x1x128xf32, #tpu.memory_space<vmem>>, vector<1x1x128xf32>
    %23 = vector.shape_cast %22 : vector<1x1x128xf32> to vector<1x128xf32>
    %24 = arith.addf %2, %23 : vector<1x128xf32>
    %c2_i32 = arith.constant 2 : i32
    %25 = arith.addi %0, %c2_i32 : i32
    %26 = arith.index_cast %25 : i32 to index
    %27 = arith.index_cast %c0_i32 : i32 to index
    %28 = memref.load %arg1[%26, %27] : memref<8x8xi32, #tpu.memory_space<smem>>
    %29 = arith.index_cast %28 : i32 to index
    %c0_11 = arith.constant 0 : index
    %c0_12 = arith.constant 0 : index
    %30 = vector.load %arg4[%29, %c0_11, %c0_12] : memref<20x1x128xf32, #tpu.memory_space<vmem>>, vector<1x1x128xf32>
    %31 = vector.shape_cast %30 : vector<1x1x128xf32> to vector<1x128xf32>
    %32 = arith.addf %3, %31 : vector<1x128xf32>
    %c3_i32 = arith.constant 3 : i32
    %33 = arith.addi %0, %c3_i32 : i32
    %34 = arith.index_cast %33 : i32 to index
    %35 = arith.index_cast %c0_i32 : i32 to index
    %36 = memref.load %arg1[%34, %35] : memref<8x8xi32, #tpu.memory_space<smem>>
    %37 = arith.index_cast %36 : i32 to index
    %c0_13 = arith.constant 0 : index
    %c0_14 = arith.constant 0 : index
    %38 = vector.load %arg4[%37, %c0_13, %c0_14] : memref<20x1x128xf32, #tpu.memory_space<vmem>>, vector<1x1x128xf32>
    %39 = vector.shape_cast %38 : vector<1x1x128xf32> to vector<1x128xf32>
    %40 = arith.addf %4, %39 : vector<1x128xf32>
    %c4_i32 = arith.constant 4 : i32
    %41 = arith.addi %0, %c4_i32 : i32
    %42 = arith.index_cast %41 : i32 to index
    %43 = arith.index_cast %c0_i32 : i32 to index
    %44 = memref.load %arg1[%42, %43] : memref<8x8xi32, #tpu.memory_space<smem>>
    %45 = arith.index_cast %44 : i32 to index
    %c0_15 = arith.constant 0 : index
    %c0_16 = arith.constant 0 : index
    %46 = vector.load %arg4[%45, %c0_15, %c0_16] : memref<20x1x128xf32, #tpu.memory_space<vmem>>, vector<1x1x128xf32>
    %47 = vector.shape_cast %46 : vector<1x1x128xf32> to vector<1x128xf32>
    %48 = arith.addf %5, %47 : vector<1x128xf32>
    %c5_i32 = arith.constant 5 : i32
    %49 = arith.addi %0, %c5_i32 : i32
    %50 = arith.index_cast %49 : i32 to index
    %51 = arith.index_cast %c0_i32 : i32 to index
    %52 = memref.load %arg1[%50, %51] : memref<8x8xi32, #tpu.memory_space<smem>>
    %53 = arith.index_cast %52 : i32 to index
    %c0_17 = arith.constant 0 : index
    %c0_18 = arith.constant 0 : index
    %54 = vector.load %arg4[%53, %c0_17, %c0_18] : memref<20x1x128xf32, #tpu.memory_space<vmem>>, vector<1x1x128xf32>
    %55 = vector.shape_cast %54 : vector<1x1x128xf32> to vector<1x128xf32>
    %56 = arith.addf %6, %55 : vector<1x128xf32>
    %c6_i32 = arith.constant 6 : i32
    %57 = arith.addi %0, %c6_i32 : i32
    %58 = arith.index_cast %57 : i32 to index
    %59 = arith.index_cast %c0_i32 : i32 to index
    %60 = memref.load %arg1[%58, %59] : memref<8x8xi32, #tpu.memory_space<smem>>
    %61 = arith.index_cast %60 : i32 to index
    %c0_19 = arith.constant 0 : index
    %c0_20 = arith.constant 0 : index
    %62 = vector.load %arg4[%61, %c0_19, %c0_20] : memref<20x1x128xf32, #tpu.memory_space<vmem>>, vector<1x1x128xf32>
    %63 = vector.shape_cast %62 : vector<1x1x128xf32> to vector<1x128xf32>
    %64 = arith.addf %7, %63 : vector<1x128xf32>
    %c7_i32 = arith.constant 7 : i32
    %65 = arith.addi %0, %c7_i32 : i32
    %66 = arith.index_cast %65 : i32 to index
    %67 = arith.index_cast %c0_i32 : i32 to index
    %68 = memref.load %arg1[%66, %67] : memref<8x8xi32, #tpu.memory_space<smem>>
    %69 = arith.index_cast %68 : i32 to index
    %c0_21 = arith.constant 0 : index
    %c0_22 = arith.constant 0 : index
    %70 = vector.load %arg4[%69, %c0_21, %c0_22] : memref<20x1x128xf32, #tpu.memory_space<vmem>>, vector<1x1x128xf32>
    %71 = vector.shape_cast %70 : vector<1x1x128xf32> to vector<1x128xf32>
    %72 = arith.addf %8, %71 : vector<1x128xf32>
    %c1_i32_23 = arith.constant 1 : i32
    %c0_i32_24 = arith.constant 0 : i32
    %73 = arith.addi %0, %c0_i32_24 : i32
    %74 = arith.index_cast %73 : i32 to index
    %75 = arith.index_cast %c1_i32_23 : i32 to index
    %76 = memref.load %arg1[%74, %75] : memref<8x8xi32, #tpu.memory_space<smem>>
    %77 = arith.index_cast %76 : i32 to index
    %c0_25 = arith.constant 0 : index
    %c0_26 = arith.constant 0 : index
    %78 = vector.load %arg4[%77, %c0_25, %c0_26] : memref<20x1x128xf32, #tpu.memory_space<vmem>>, vector<1x1x128xf32>
    %79 = vector.shape_cast %78 : vector<1x1x128xf32> to vector<1x128xf32>
    %80 = arith.addf %16, %79 : vector<1x128xf32>
    %c1_i32_27 = arith.constant 1 : i32
    %81 = arith.addi %0, %c1_i32_27 : i32
    %82 = arith.index_cast %81 : i32 to index
    %83 = arith.index_cast %c1_i32_23 : i32 to index
    %84 = memref.load %arg1[%82, %83] : memref<8x8xi32, #tpu.memory_space<smem>>
    %85 = arith.index_cast %84 : i32 to index
    %c0_28 = arith.constant 0 : index
    %c0_29 = arith.constant 0 : index
    %86 = vector.load %arg4[%85, %c0_28, %c0_29] : memref<20x1x128xf32, #tpu.memory_space<vmem>>, vector<1x1x128xf32>
    %87 = vector.shape_cast %86 : vector<1x1x128xf32> to vector<1x128xf32>
    %88 = arith.addf %24, %87 : vector<1x128xf32>
    %c2_i32_30 = arith.constant 2 : i32
    %89 = arith.addi %0, %c2_i32_30 : i32
    %90 = arith.index_cast %89 : i32 to index
    %91 = arith.index_cast %c1_i32_23 : i32 to index
    %92 = memref.load %arg1[%90, %91] : memref<8x8xi32, #tpu.memory_space<smem>>
    %93 = arith.index_cast %92 : i32 to index
    %c0_31 = arith.constant 0 : index
    %c0_32 = arith.constant 0 : index
    %94 = vector.load %arg4[%93, %c0_31, %c0_32] : memref<20x1x128xf32, #tpu.memory_space<vmem>>, vector<1x1x128xf32>
    %95 = vector.shape_cast %94 : vector<1x1x128xf32> to vector<1x128xf32>
    %96 = arith.addf %32, %95 : vector<1x128xf32>
    %c3_i32_33 = arith.constant 3 : i32
    %97 = arith.addi %0, %c3_i32_33 : i32
    %98 = arith.index_cast %97 : i32 to index
    %99 = arith.index_cast %c1_i32_23 : i32 to index
    %100 = memref.load %arg1[%98, %99] : memref<8x8xi32, #tpu.memory_space<smem>>
    %101 = arith.index_cast %100 : i32 to index
    %c0_34 = arith.constant 0 : index
    %c0_35 = arith.constant 0 : index
    %102 = vector.load %arg4[%101, %c0_34, %c0_35] : memref<20x1x128xf32, #tpu.memory_space<vmem>>, vector<1x1x128xf32>
    %103 = vector.shape_cast %102 : vector<1x1x128xf32> to vector<1x128xf32>
    %104 = arith.addf %40, %103 : vector<1x128xf32>
    %c4_i32_36 = arith.constant 4 : i32
    %105 = arith.addi %0, %c4_i32_36 : i32
    %106 = arith.index_cast %105 : i32 to index
    %107 = arith.index_cast %c1_i32_23 : i32 to index
    %108 = memref.load %arg1[%106, %107] : memref<8x8xi32, #tpu.memory_space<smem>>
    %109 = arith.index_cast %108 : i32 to index
    %c0_37 = arith.constant 0 : index
    %c0_38 = arith.constant 0 : index
    %110 = vector.load %arg4[%109, %c0_37, %c0_38] : memref<20x1x128xf32, #tpu.memory_space<vmem>>, vector<1x1x128xf32>
    %111 = vector.shape_cast %110 : vector<1x1x128xf32> to vector<1x128xf32>
    %112 = arith.addf %48, %111 : vector<1x128xf32>
    %c5_i32_39 = arith.constant 5 : i32
    %113 = arith.addi %0, %c5_i32_39 : i32
    %114 = arith.index_cast %113 : i32 to index
    %115 = arith.index_cast %c1_i32_23 : i32 to index
    %116 = memref.load %arg1[%114, %115] : memref<8x8xi32, #tpu.memory_space<smem>>
    %117 = arith.index_cast %116 : i32 to index
    %c0_40 = arith.constant 0 : index
    %c0_41 = arith.constant 0 : index
    %118 = vector.load %arg4[%117, %c0_40, %c0_41] : memref<20x1x128xf32, #tpu.memory_space<vmem>>, vector<1x1x128xf32>
    %119 = vector.shape_cast %118 : vector<1x1x128xf32> to vector<1x128xf32>
    %120 = arith.addf %56, %119 : vector<1x128xf32>
    %c6_i32_42 = arith.constant 6 : i32
    %121 = arith.addi %0, %c6_i32_42 : i32
    %122 = arith.index_cast %121 : i32 to index
    %123 = arith.index_cast %c1_i32_23 : i32 to index
    %124 = memref.load %arg1[%122, %123] : memref<8x8xi32, #tpu.memory_space<smem>>
    %125 = arith.index_cast %124 : i32 to index
    %c0_43 = arith.constant 0 : index
    %c0_44 = arith.constant 0 : index
    %126 = vector.load %arg4[%125, %c0_43, %c0_44] : memref<20x1x128xf32, #tpu.memory_space<vmem>>, vector<1x1x128xf32>
    %127 = vector.shape_cast %126 : vector<1x1x128xf32> to vector<1x128xf32>
    %128 = arith.addf %64, %127 : vector<1x128xf32>
    %c7_i32_45 = arith.constant 7 : i32
    %129 = arith.addi %0, %c7_i32_45 : i32
    %130 = arith.index_cast %129 : i32 to index
    %131 = arith.index_cast %c1_i32_23 : i32 to index
    %132 = memref.load %arg1[%130, %131] : memref<8x8xi32, #tpu.memory_space<smem>>
    %133 = arith.index_cast %132 : i32 to index
    %c0_46 = arith.constant 0 : index
    %c0_47 = arith.constant 0 : index
    %134 = vector.load %arg4[%133, %c0_46, %c0_47] : memref<20x1x128xf32, #tpu.memory_space<vmem>>, vector<1x1x128xf32>
    %135 = vector.shape_cast %134 : vector<1x1x128xf32> to vector<1x128xf32>
    %136 = arith.addf %72, %135 : vector<1x128xf32>
    %c2_i32_48 = arith.constant 2 : i32
    %c0_i32_49 = arith.constant 0 : i32
    %137 = arith.addi %0, %c0_i32_49 : i32
    %138 = arith.index_cast %137 : i32 to index
    %139 = arith.index_cast %c2_i32_48 : i32 to index
    %140 = memref.load %arg1[%138, %139] : memref<8x8xi32, #tpu.memory_space<smem>>
    %141 = arith.index_cast %140 : i32 to index
    %c0_50 = arith.constant 0 : index
    %c0_51 = arith.constant 0 : index
    %142 = vector.load %arg4[%141, %c0_50, %c0_51] : memref<20x1x128xf32, #tpu.memory_space<vmem>>, vector<1x1x128xf32>
    %143 = vector.shape_cast %142 : vector<1x1x128xf32> to vector<1x128xf32>
    %144 = arith.addf %80, %143 : vector<1x128xf32>
    %c1_i32_52 = arith.constant 1 : i32
    %145 = arith.addi %0, %c1_i32_52 : i32
    %146 = arith.index_cast %145 : i32 to index
    %147 = arith.index_cast %c2_i32_48 : i32 to index
    %148 = memref.load %arg1[%146, %147] : memref<8x8xi32, #tpu.memory_space<smem>>
    %149 = arith.index_cast %148 : i32 to index
    %c0_53 = arith.constant 0 : index
    %c0_54 = arith.constant 0 : index
    %150 = vector.load %arg4[%149, %c0_53, %c0_54] : memref<20x1x128xf32, #tpu.memory_space<vmem>>, vector<1x1x128xf32>
    %151 = vector.shape_cast %150 : vector<1x1x128xf32> to vector<1x128xf32>
    %152 = arith.addf %88, %151 : vector<1x128xf32>
    %c2_i32_55 = arith.constant 2 : i32
    %153 = arith.addi %0, %c2_i32_55 : i32
    %154 = arith.index_cast %153 : i32 to index
    %155 = arith.index_cast %c2_i32_48 : i32 to index
    %156 = memref.load %arg1[%154, %155] : memref<8x8xi32, #tpu.memory_space<smem>>
    %157 = arith.index_cast %156 : i32 to index
    %c0_56 = arith.constant 0 : index
    %c0_57 = arith.constant 0 : index
    %158 = vector.load %arg4[%157, %c0_56, %c0_57] : memref<20x1x128xf32, #tpu.memory_space<vmem>>, vector<1x1x128xf32>
    %159 = vector.shape_cast %158 : vector<1x1x128xf32> to vector<1x128xf32>
    %160 = arith.addf %96, %159 : vector<1x128xf32>
    %c3_i32_58 = arith.constant 3 : i32
    %161 = arith.addi %0, %c3_i32_58 : i32
    %162 = arith.index_cast %161 : i32 to index
    %163 = arith.index_cast %c2_i32_48 : i32 to index
    %164 = memref.load %arg1[%162, %163] : memref<8x8xi32, #tpu.memory_space<smem>>
    %165 = arith.index_cast %164 : i32 to index
    %c0_59 = arith.constant 0 : index
    %c0_60 = arith.constant 0 : index
    %166 = vector.load %arg4[%165, %c0_59, %c0_60] : memref<20x1x128xf32, #tpu.memory_space<vmem>>, vector<1x1x128xf32>
    %167 = vector.shape_cast %166 : vector<1x1x128xf32> to vector<1x128xf32>
    %168 = arith.addf %104, %167 : vector<1x128xf32>
    %c4_i32_61 = arith.constant 4 : i32
    %169 = arith.addi %0, %c4_i32_61 : i32
    %170 = arith.index_cast %169 : i32 to index
    %171 = arith.index_cast %c2_i32_48 : i32 to index
    %172 = memref.load %arg1[%170, %171] : memref<8x8xi32, #tpu.memory_space<smem>>
    %173 = arith.index_cast %172 : i32 to index
    %c0_62 = arith.constant 0 : index
    %c0_63 = arith.constant 0 : index
    %174 = vector.load %arg4[%173, %c0_62, %c0_63] : memref<20x1x128xf32, #tpu.memory_space<vmem>>, vector<1x1x128xf32>
    %175 = vector.shape_cast %174 : vector<1x1x128xf32> to vector<1x128xf32>
    %176 = arith.addf %112, %175 : vector<1x128xf32>
    %c5_i32_64 = arith.constant 5 : i32
    %177 = arith.addi %0, %c5_i32_64 : i32
    %178 = arith.index_cast %177 : i32 to index
    %179 = arith.index_cast %c2_i32_48 : i32 to index
    %180 = memref.load %arg1[%178, %179] : memref<8x8xi32, #tpu.memory_space<smem>>
    %181 = arith.index_cast %180 : i32 to index
    %c0_65 = arith.constant 0 : index
    %c0_66 = arith.constant 0 : index
    %182 = vector.load %arg4[%181, %c0_65, %c0_66] : memref<20x1x128xf32, #tpu.memory_space<vmem>>, vector<1x1x128xf32>
    %183 = vector.shape_cast %182 : vector<1x1x128xf32> to vector<1x128xf32>
    %184 = arith.addf %120, %183 : vector<1x128xf32>
    %c6_i32_67 = arith.constant 6 : i32
    %185 = arith.addi %0, %c6_i32_67 : i32
    %186 = arith.index_cast %185 : i32 to index
    %187 = arith.index_cast %c2_i32_48 : i32 to index
    %188 = memref.load %arg1[%186, %187] : memref<8x8xi32, #tpu.memory_space<smem>>
    %189 = arith.index_cast %188 : i32 to index
    %c0_68 = arith.constant 0 : index
    %c0_69 = arith.constant 0 : index
    %190 = vector.load %arg4[%189, %c0_68, %c0_69] : memref<20x1x128xf32, #tpu.memory_space<vmem>>, vector<1x1x128xf32>
    %191 = vector.shape_cast %190 : vector<1x1x128xf32> to vector<1x128xf32>
    %192 = arith.addf %128, %191 : vector<1x128xf32>
    %c7_i32_70 = arith.constant 7 : i32
    %193 = arith.addi %0, %c7_i32_70 : i32
    %194 = arith.index_cast %193 : i32 to index
    %195 = arith.index_cast %c2_i32_48 : i32 to index
    %196 = memref.load %arg1[%194, %195] : memref<8x8xi32, #tpu.memory_space<smem>>
    %197 = arith.index_cast %196 : i32 to index
    %c0_71 = arith.constant 0 : index
    %c0_72 = arith.constant 0 : index
    %198 = vector.load %arg4[%197, %c0_71, %c0_72] : memref<20x1x128xf32, #tpu.memory_space<vmem>>, vector<1x1x128xf32>
    %199 = vector.shape_cast %198 : vector<1x1x128xf32> to vector<1x128xf32>
    %200 = arith.addf %136, %199 : vector<1x128xf32>
    %c3_i32_73 = arith.constant 3 : i32
    %c0_i32_74 = arith.constant 0 : i32
    %201 = arith.addi %0, %c0_i32_74 : i32
    %202 = arith.index_cast %201 : i32 to index
    %203 = arith.index_cast %c3_i32_73 : i32 to index
    %204 = memref.load %arg1[%202, %203] : memref<8x8xi32, #tpu.memory_space<smem>>
    %205 = arith.index_cast %204 : i32 to index
    %c0_75 = arith.constant 0 : index
    %c0_76 = arith.constant 0 : index
    %206 = vector.load %arg4[%205, %c0_75, %c0_76] : memref<20x1x128xf32, #tpu.memory_space<vmem>>, vector<1x1x128xf32>
    %207 = vector.shape_cast %206 : vector<1x1x128xf32> to vector<1x128xf32>
    %208 = arith.addf %144, %207 : vector<1x128xf32>
    %c1_i32_77 = arith.constant 1 : i32
    %209 = arith.addi %0, %c1_i32_77 : i32
    %210 = arith.index_cast %209 : i32 to index
    %211 = arith.index_cast %c3_i32_73 : i32 to index
    %212 = memref.load %arg1[%210, %211] : memref<8x8xi32, #tpu.memory_space<smem>>
    %213 = arith.index_cast %212 : i32 to index
    %c0_78 = arith.constant 0 : index
    %c0_79 = arith.constant 0 : index
    %214 = vector.load %arg4[%213, %c0_78, %c0_79] : memref<20x1x128xf32, #tpu.memory_space<vmem>>, vector<1x1x128xf32>
    %215 = vector.shape_cast %214 : vector<1x1x128xf32> to vector<1x128xf32>
    %216 = arith.addf %152, %215 : vector<1x128xf32>
    %c2_i32_80 = arith.constant 2 : i32
    %217 = arith.addi %0, %c2_i32_80 : i32
    %218 = arith.index_cast %217 : i32 to index
    %219 = arith.index_cast %c3_i32_73 : i32 to index
    %220 = memref.load %arg1[%218, %219] : memref<8x8xi32, #tpu.memory_space<smem>>
    %221 = arith.index_cast %220 : i32 to index
    %c0_81 = arith.constant 0 : index
    %c0_82 = arith.constant 0 : index
    %222 = vector.load %arg4[%221, %c0_81, %c0_82] : memref<20x1x128xf32, #tpu.memory_space<vmem>>, vector<1x1x128xf32>
    %223 = vector.shape_cast %222 : vector<1x1x128xf32> to vector<1x128xf32>
    %224 = arith.addf %160, %223 : vector<1x128xf32>
    %c3_i32_83 = arith.constant 3 : i32
    %225 = arith.addi %0, %c3_i32_83 : i32
    %226 = arith.index_cast %225 : i32 to index
    %227 = arith.index_cast %c3_i32_73 : i32 to index
    %228 = memref.load %arg1[%226, %227] : memref<8x8xi32, #tpu.memory_space<smem>>
    %229 = arith.index_cast %228 : i32 to index
    %c0_84 = arith.constant 0 : index
    %c0_85 = arith.constant 0 : index
    %230 = vector.load %arg4[%229, %c0_84, %c0_85] : memref<20x1x128xf32, #tpu.memory_space<vmem>>, vector<1x1x128xf32>
    %231 = vector.shape_cast %230 : vector<1x1x128xf32> to vector<1x128xf32>
    %232 = arith.addf %168, %231 : vector<1x128xf32>
    %c4_i32_86 = arith.constant 4 : i32
    %233 = arith.addi %0, %c4_i32_86 : i32
    %234 = arith.index_cast %233 : i32 to index
    %235 = arith.index_cast %c3_i32_73 : i32 to index
    %236 = memref.load %arg1[%234, %235] : memref<8x8xi32, #tpu.memory_space<smem>>
    %237 = arith.index_cast %236 : i32 to index
    %c0_87 = arith.constant 0 : index
    %c0_88 = arith.constant 0 : index
    %238 = vector.load %arg4[%237, %c0_87, %c0_88] : memref<20x1x128xf32, #tpu.memory_space<vmem>>, vector<1x1x128xf32>
    %239 = vector.shape_cast %238 : vector<1x1x128xf32> to vector<1x128xf32>
    %240 = arith.addf %176, %239 : vector<1x128xf32>
    %c5_i32_89 = arith.constant 5 : i32
    %241 = arith.addi %0, %c5_i32_89 : i32
    %242 = arith.index_cast %241 : i32 to index
    %243 = arith.index_cast %c3_i32_73 : i32 to index
    %244 = memref.load %arg1[%242, %243] : memref<8x8xi32, #tpu.memory_space<smem>>
    %245 = arith.index_cast %244 : i32 to index
    %c0_90 = arith.constant 0 : index
    %c0_91 = arith.constant 0 : index
    %246 = vector.load %arg4[%245, %c0_90, %c0_91] : memref<20x1x128xf32, #tpu.memory_space<vmem>>, vector<1x1x128xf32>
    %247 = vector.shape_cast %246 : vector<1x1x128xf32> to vector<1x128xf32>
    %248 = arith.addf %184, %247 : vector<1x128xf32>
    %c6_i32_92 = arith.constant 6 : i32
    %249 = arith.addi %0, %c6_i32_92 : i32
    %250 = arith.index_cast %249 : i32 to index
    %251 = arith.index_cast %c3_i32_73 : i32 to index
    %252 = memref.load %arg1[%250, %251] : memref<8x8xi32, #tpu.memory_space<smem>>
    %253 = arith.index_cast %252 : i32 to index
    %c0_93 = arith.constant 0 : index
    %c0_94 = arith.constant 0 : index
    %254 = vector.load %arg4[%253, %c0_93, %c0_94] : memref<20x1x128xf32, #tpu.memory_space<vmem>>, vector<1x1x128xf32>
    %255 = vector.shape_cast %254 : vector<1x1x128xf32> to vector<1x128xf32>
    %256 = arith.addf %192, %255 : vector<1x128xf32>
    %c7_i32_95 = arith.constant 7 : i32
    %257 = arith.addi %0, %c7_i32_95 : i32
    %258 = arith.index_cast %257 : i32 to index
    %259 = arith.index_cast %c3_i32_73 : i32 to index
    %260 = memref.load %arg1[%258, %259] : memref<8x8xi32, #tpu.memory_space<smem>>
    %261 = arith.index_cast %260 : i32 to index
    %c0_96 = arith.constant 0 : index
    %c0_97 = arith.constant 0 : index
    %262 = vector.load %arg4[%261, %c0_96, %c0_97] : memref<20x1x128xf32, #tpu.memory_space<vmem>>, vector<1x1x128xf32>
    %263 = vector.shape_cast %262 : vector<1x1x128xf32> to vector<1x128xf32>
    %264 = arith.addf %200, %263 : vector<1x128xf32>
    %c4_i32_98 = arith.constant 4 : i32
    %c0_i32_99 = arith.constant 0 : i32
    %265 = arith.addi %0, %c0_i32_99 : i32
    %266 = arith.index_cast %265 : i32 to index
    %267 = arith.index_cast %c4_i32_98 : i32 to index
    %268 = memref.load %arg1[%266, %267] : memref<8x8xi32, #tpu.memory_space<smem>>
    %269 = arith.index_cast %268 : i32 to index
    %c0_100 = arith.constant 0 : index
    %c0_101 = arith.constant 0 : index
    %270 = vector.load %arg4[%269, %c0_100, %c0_101] : memref<20x1x128xf32, #tpu.memory_space<vmem>>, vector<1x1x128xf32>
    %271 = vector.shape_cast %270 : vector<1x1x128xf32> to vector<1x128xf32>
    %272 = arith.addf %208, %271 : vector<1x128xf32>
    %c1_i32_102 = arith.constant 1 : i32
    %273 = arith.addi %0, %c1_i32_102 : i32
    %274 = arith.index_cast %273 : i32 to index
    %275 = arith.index_cast %c4_i32_98 : i32 to index
    %276 = memref.load %arg1[%274, %275] : memref<8x8xi32, #tpu.memory_space<smem>>
    %277 = arith.index_cast %276 : i32 to index
    %c0_103 = arith.constant 0 : index
    %c0_104 = arith.constant 0 : index
    %278 = vector.load %arg4[%277, %c0_103, %c0_104] : memref<20x1x128xf32, #tpu.memory_space<vmem>>, vector<1x1x128xf32>
    %279 = vector.shape_cast %278 : vector<1x1x128xf32> to vector<1x128xf32>
    %280 = arith.addf %216, %279 : vector<1x128xf32>
    %c2_i32_105 = arith.constant 2 : i32
    %281 = arith.addi %0, %c2_i32_105 : i32
    %282 = arith.index_cast %281 : i32 to index
    %283 = arith.index_cast %c4_i32_98 : i32 to index
    %284 = memref.load %arg1[%282, %283] : memref<8x8xi32, #tpu.memory_space<smem>>
    %285 = arith.index_cast %284 : i32 to index
    %c0_106 = arith.constant 0 : index
    %c0_107 = arith.constant 0 : index
    %286 = vector.load %arg4[%285, %c0_106, %c0_107] : memref<20x1x128xf32, #tpu.memory_space<vmem>>, vector<1x1x128xf32>
    %287 = vector.shape_cast %286 : vector<1x1x128xf32> to vector<1x128xf32>
    %288 = arith.addf %224, %287 : vector<1x128xf32>
    %c3_i32_108 = arith.constant 3 : i32
    %289 = arith.addi %0, %c3_i32_108 : i32
    %290 = arith.index_cast %289 : i32 to index
    %291 = arith.index_cast %c4_i32_98 : i32 to index
    %292 = memref.load %arg1[%290, %291] : memref<8x8xi32, #tpu.memory_space<smem>>
    %293 = arith.index_cast %292 : i32 to index
    %c0_109 = arith.constant 0 : index
    %c0_110 = arith.constant 0 : index
    %294 = vector.load %arg4[%293, %c0_109, %c0_110] : memref<20x1x128xf32, #tpu.memory_space<vmem>>, vector<1x1x128xf32>
    %295 = vector.shape_cast %294 : vector<1x1x128xf32> to vector<1x128xf32>
    %296 = arith.addf %232, %295 : vector<1x128xf32>
    %c4_i32_111 = arith.constant 4 : i32
    %297 = arith.addi %0, %c4_i32_111 : i32
    %298 = arith.index_cast %297 : i32 to index
    %299 = arith.index_cast %c4_i32_98 : i32 to index
    %300 = memref.load %arg1[%298, %299] : memref<8x8xi32, #tpu.memory_space<smem>>
    %301 = arith.index_cast %300 : i32 to index
    %c0_112 = arith.constant 0 : index
    %c0_113 = arith.constant 0 : index
    %302 = vector.load %arg4[%301, %c0_112, %c0_113] : memref<20x1x128xf32, #tpu.memory_space<vmem>>, vector<1x1x128xf32>
    %303 = vector.shape_cast %302 : vector<1x1x128xf32> to vector<1x128xf32>
    %304 = arith.addf %240, %303 : vector<1x128xf32>
    %c5_i32_114 = arith.constant 5 : i32
    %305 = arith.addi %0, %c5_i32_114 : i32
    %306 = arith.index_cast %305 : i32 to index
    %307 = arith.index_cast %c4_i32_98 : i32 to index
    %308 = memref.load %arg1[%306, %307] : memref<8x8xi32, #tpu.memory_space<smem>>
    %309 = arith.index_cast %308 : i32 to index
    %c0_115 = arith.constant 0 : index
    %c0_116 = arith.constant 0 : index
    %310 = vector.load %arg4[%309, %c0_115, %c0_116] : memref<20x1x128xf32, #tpu.memory_space<vmem>>, vector<1x1x128xf32>
    %311 = vector.shape_cast %310 : vector<1x1x128xf32> to vector<1x128xf32>
    %312 = arith.addf %248, %311 : vector<1x128xf32>
    %c6_i32_117 = arith.constant 6 : i32
    %313 = arith.addi %0, %c6_i32_117 : i32
    %314 = arith.index_cast %313 : i32 to index
    %315 = arith.index_cast %c4_i32_98 : i32 to index
    %316 = memref.load %arg1[%314, %315] : memref<8x8xi32, #tpu.memory_space<smem>>
    %317 = arith.index_cast %316 : i32 to index
    %c0_118 = arith.constant 0 : index
    %c0_119 = arith.constant 0 : index
    %318 = vector.load %arg4[%317, %c0_118, %c0_119] : memref<20x1x128xf32, #tpu.memory_space<vmem>>, vector<1x1x128xf32>
    %319 = vector.shape_cast %318 : vector<1x1x128xf32> to vector<1x128xf32>
    %320 = arith.addf %256, %319 : vector<1x128xf32>
    %c7_i32_120 = arith.constant 7 : i32
    %321 = arith.addi %0, %c7_i32_120 : i32
    %322 = arith.index_cast %321 : i32 to index
    %323 = arith.index_cast %c4_i32_98 : i32 to index
    %324 = memref.load %arg1[%322, %323] : memref<8x8xi32, #tpu.memory_space<smem>>
    %325 = arith.index_cast %324 : i32 to index
    %c0_121 = arith.constant 0 : index
    %c0_122 = arith.constant 0 : index
    %326 = vector.load %arg4[%325, %c0_121, %c0_122] : memref<20x1x128xf32, #tpu.memory_space<vmem>>, vector<1x1x128xf32>
    %327 = vector.shape_cast %326 : vector<1x1x128xf32> to vector<1x128xf32>
    %328 = arith.addf %264, %327 : vector<1x128xf32>
    %c5_i32_123 = arith.constant 5 : i32
    %c0_i32_124 = arith.constant 0 : i32
    %329 = arith.addi %0, %c0_i32_124 : i32
    %330 = arith.index_cast %329 : i32 to index
    %331 = arith.index_cast %c5_i32_123 : i32 to index
    %332 = memref.load %arg1[%330, %331] : memref<8x8xi32, #tpu.memory_space<smem>>
    %333 = arith.index_cast %332 : i32 to index
    %c0_125 = arith.constant 0 : index
    %c0_126 = arith.constant 0 : index
    %334 = vector.load %arg4[%333, %c0_125, %c0_126] : memref<20x1x128xf32, #tpu.memory_space<vmem>>, vector<1x1x128xf32>
    %335 = vector.shape_cast %334 : vector<1x1x128xf32> to vector<1x128xf32>
    %336 = arith.addf %272, %335 : vector<1x128xf32>
    %c1_i32_127 = arith.constant 1 : i32
    %337 = arith.addi %0, %c1_i32_127 : i32
    %338 = arith.index_cast %337 : i32 to index
    %339 = arith.index_cast %c5_i32_123 : i32 to index
    %340 = memref.load %arg1[%338, %339] : memref<8x8xi32, #tpu.memory_space<smem>>
    %341 = arith.index_cast %340 : i32 to index
    %c0_128 = arith.constant 0 : index
    %c0_129 = arith.constant 0 : index
    %342 = vector.load %arg4[%341, %c0_128, %c0_129] : memref<20x1x128xf32, #tpu.memory_space<vmem>>, vector<1x1x128xf32>
    %343 = vector.shape_cast %342 : vector<1x1x128xf32> to vector<1x128xf32>
    %344 = arith.addf %280, %343 : vector<1x128xf32>
    %c2_i32_130 = arith.constant 2 : i32
    %345 = arith.addi %0, %c2_i32_130 : i32
    %346 = arith.index_cast %345 : i32 to index
    %347 = arith.index_cast %c5_i32_123 : i32 to index
    %348 = memref.load %arg1[%346, %347] : memref<8x8xi32, #tpu.memory_space<smem>>
    %349 = arith.index_cast %348 : i32 to index
    %c0_131 = arith.constant 0 : index
    %c0_132 = arith.constant 0 : index
    %350 = vector.load %arg4[%349, %c0_131, %c0_132] : memref<20x1x128xf32, #tpu.memory_space<vmem>>, vector<1x1x128xf32>
    %351 = vector.shape_cast %350 : vector<1x1x128xf32> to vector<1x128xf32>
    %352 = arith.addf %288, %351 : vector<1x128xf32>
    %c3_i32_133 = arith.constant 3 : i32
    %353 = arith.addi %0, %c3_i32_133 : i32
    %354 = arith.index_cast %353 : i32 to index
    %355 = arith.index_cast %c5_i32_123 : i32 to index
    %356 = memref.load %arg1[%354, %355] : memref<8x8xi32, #tpu.memory_space<smem>>
    %357 = arith.index_cast %356 : i32 to index
    %c0_134 = arith.constant 0 : index
    %c0_135 = arith.constant 0 : index
    %358 = vector.load %arg4[%357, %c0_134, %c0_135] : memref<20x1x128xf32, #tpu.memory_space<vmem>>, vector<1x1x128xf32>
    %359 = vector.shape_cast %358 : vector<1x1x128xf32> to vector<1x128xf32>
    %360 = arith.addf %296, %359 : vector<1x128xf32>
    %c4_i32_136 = arith.constant 4 : i32
    %361 = arith.addi %0, %c4_i32_136 : i32
    %362 = arith.index_cast %361 : i32 to index
    %363 = arith.index_cast %c5_i32_123 : i32 to index
    %364 = memref.load %arg1[%362, %363] : memref<8x8xi32, #tpu.memory_space<smem>>
    %365 = arith.index_cast %364 : i32 to index
    %c0_137 = arith.constant 0 : index
    %c0_138 = arith.constant 0 : index
    %366 = vector.load %arg4[%365, %c0_137, %c0_138] : memref<20x1x128xf32, #tpu.memory_space<vmem>>, vector<1x1x128xf32>
    %367 = vector.shape_cast %366 : vector<1x1x128xf32> to vector<1x128xf32>
    %368 = arith.addf %304, %367 : vector<1x128xf32>
    %c5_i32_139 = arith.constant 5 : i32
    %369 = arith.addi %0, %c5_i32_139 : i32
    %370 = arith.index_cast %369 : i32 to index
    %371 = arith.index_cast %c5_i32_123 : i32 to index
    %372 = memref.load %arg1[%370, %371] : memref<8x8xi32, #tpu.memory_space<smem>>
    %373 = arith.index_cast %372 : i32 to index
    %c0_140 = arith.constant 0 : index
    %c0_141 = arith.constant 0 : index
    %374 = vector.load %arg4[%373, %c0_140, %c0_141] : memref<20x1x128xf32, #tpu.memory_space<vmem>>, vector<1x1x128xf32>
    %375 = vector.shape_cast %374 : vector<1x1x128xf32> to vector<1x128xf32>
    %376 = arith.addf %312, %375 : vector<1x128xf32>
    %c6_i32_142 = arith.constant 6 : i32
    %377 = arith.addi %0, %c6_i32_142 : i32
    %378 = arith.index_cast %377 : i32 to index
    %379 = arith.index_cast %c5_i32_123 : i32 to index
    %380 = memref.load %arg1[%378, %379] : memref<8x8xi32, #tpu.memory_space<smem>>
    %381 = arith.index_cast %380 : i32 to index
    %c0_143 = arith.constant 0 : index
    %c0_144 = arith.constant 0 : index
    %382 = vector.load %arg4[%381, %c0_143, %c0_144] : memref<20x1x128xf32, #tpu.memory_space<vmem>>, vector<1x1x128xf32>
    %383 = vector.shape_cast %382 : vector<1x1x128xf32> to vector<1x128xf32>
    %384 = arith.addf %320, %383 : vector<1x128xf32>
    %c7_i32_145 = arith.constant 7 : i32
    %385 = arith.addi %0, %c7_i32_145 : i32
    %386 = arith.index_cast %385 : i32 to index
    %387 = arith.index_cast %c5_i32_123 : i32 to index
    %388 = memref.load %arg1[%386, %387] : memref<8x8xi32, #tpu.memory_space<smem>>
    %389 = arith.index_cast %388 : i32 to index
    %c0_146 = arith.constant 0 : index
    %c0_147 = arith.constant 0 : index
    %390 = vector.load %arg4[%389, %c0_146, %c0_147] : memref<20x1x128xf32, #tpu.memory_space<vmem>>, vector<1x1x128xf32>
    %391 = vector.shape_cast %390 : vector<1x1x128xf32> to vector<1x128xf32>
    %392 = arith.addf %328, %391 : vector<1x128xf32>
    %c6_i32_148 = arith.constant 6 : i32
    %c0_i32_149 = arith.constant 0 : i32
    %393 = arith.addi %0, %c0_i32_149 : i32
    %394 = arith.index_cast %393 : i32 to index
    %395 = arith.index_cast %c6_i32_148 : i32 to index
    %396 = memref.load %arg1[%394, %395] : memref<8x8xi32, #tpu.memory_space<smem>>
    %397 = arith.index_cast %396 : i32 to index
    %c0_150 = arith.constant 0 : index
    %c0_151 = arith.constant 0 : index
    %398 = vector.load %arg4[%397, %c0_150, %c0_151] : memref<20x1x128xf32, #tpu.memory_space<vmem>>, vector<1x1x128xf32>
    %399 = vector.shape_cast %398 : vector<1x1x128xf32> to vector<1x128xf32>
    %400 = arith.addf %336, %399 : vector<1x128xf32>
    %c1_i32_152 = arith.constant 1 : i32
    %401 = arith.addi %0, %c1_i32_152 : i32
    %402 = arith.index_cast %401 : i32 to index
    %403 = arith.index_cast %c6_i32_148 : i32 to index
    %404 = memref.load %arg1[%402, %403] : memref<8x8xi32, #tpu.memory_space<smem>>
    %405 = arith.index_cast %404 : i32 to index
    %c0_153 = arith.constant 0 : index
    %c0_154 = arith.constant 0 : index
    %406 = vector.load %arg4[%405, %c0_153, %c0_154] : memref<20x1x128xf32, #tpu.memory_space<vmem>>, vector<1x1x128xf32>
    %407 = vector.shape_cast %406 : vector<1x1x128xf32> to vector<1x128xf32>
    %408 = arith.addf %344, %407 : vector<1x128xf32>
    %c2_i32_155 = arith.constant 2 : i32
    %409 = arith.addi %0, %c2_i32_155 : i32
    %410 = arith.index_cast %409 : i32 to index
    %411 = arith.index_cast %c6_i32_148 : i32 to index
    %412 = memref.load %arg1[%410, %411] : memref<8x8xi32, #tpu.memory_space<smem>>
    %413 = arith.index_cast %412 : i32 to index
    %c0_156 = arith.constant 0 : index
    %c0_157 = arith.constant 0 : index
    %414 = vector.load %arg4[%413, %c0_156, %c0_157] : memref<20x1x128xf32, #tpu.memory_space<vmem>>, vector<1x1x128xf32>
    %415 = vector.shape_cast %414 : vector<1x1x128xf32> to vector<1x128xf32>
    %416 = arith.addf %352, %415 : vector<1x128xf32>
    %c3_i32_158 = arith.constant 3 : i32
    %417 = arith.addi %0, %c3_i32_158 : i32
    %418 = arith.index_cast %417 : i32 to index
    %419 = arith.index_cast %c6_i32_148 : i32 to index
    %420 = memref.load %arg1[%418, %419] : memref<8x8xi32, #tpu.memory_space<smem>>
    %421 = arith.index_cast %420 : i32 to index
    %c0_159 = arith.constant 0 : index
    %c0_160 = arith.constant 0 : index
    %422 = vector.load %arg4[%421, %c0_159, %c0_160] : memref<20x1x128xf32, #tpu.memory_space<vmem>>, vector<1x1x128xf32>
    %423 = vector.shape_cast %422 : vector<1x1x128xf32> to vector<1x128xf32>
    %424 = arith.addf %360, %423 : vector<1x128xf32>
    %c4_i32_161 = arith.constant 4 : i32
    %425 = arith.addi %0, %c4_i32_161 : i32
    %426 = arith.index_cast %425 : i32 to index
    %427 = arith.index_cast %c6_i32_148 : i32 to index
    %428 = memref.load %arg1[%426, %427] : memref<8x8xi32, #tpu.memory_space<smem>>
    %429 = arith.index_cast %428 : i32 to index
    %c0_162 = arith.constant 0 : index
    %c0_163 = arith.constant 0 : index
    %430 = vector.load %arg4[%429, %c0_162, %c0_163] : memref<20x1x128xf32, #tpu.memory_space<vmem>>, vector<1x1x128xf32>
    %431 = vector.shape_cast %430 : vector<1x1x128xf32> to vector<1x128xf32>
    %432 = arith.addf %368, %431 : vector<1x128xf32>
    %c5_i32_164 = arith.constant 5 : i32
    %433 = arith.addi %0, %c5_i32_164 : i32
    %434 = arith.index_cast %433 : i32 to index
    %435 = arith.index_cast %c6_i32_148 : i32 to index
    %436 = memref.load %arg1[%434, %435] : memref<8x8xi32, #tpu.memory_space<smem>>
    %437 = arith.index_cast %436 : i32 to index
    %c0_165 = arith.constant 0 : index
    %c0_166 = arith.constant 0 : index
    %438 = vector.load %arg4[%437, %c0_165, %c0_166] : memref<20x1x128xf32, #tpu.memory_space<vmem>>, vector<1x1x128xf32>
    %439 = vector.shape_cast %438 : vector<1x1x128xf32> to vector<1x128xf32>
    %440 = arith.addf %376, %439 : vector<1x128xf32>
    %c6_i32_167 = arith.constant 6 : i32
    %441 = arith.addi %0, %c6_i32_167 : i32
    %442 = arith.index_cast %441 : i32 to index
    %443 = arith.index_cast %c6_i32_148 : i32 to index
    %444 = memref.load %arg1[%442, %443] : memref<8x8xi32, #tpu.memory_space<smem>>
    %445 = arith.index_cast %444 : i32 to index
    %c0_168 = arith.constant 0 : index
    %c0_169 = arith.constant 0 : index
    %446 = vector.load %arg4[%445, %c0_168, %c0_169] : memref<20x1x128xf32, #tpu.memory_space<vmem>>, vector<1x1x128xf32>
    %447 = vector.shape_cast %446 : vector<1x1x128xf32> to vector<1x128xf32>
    %448 = arith.addf %384, %447 : vector<1x128xf32>
    %c7_i32_170 = arith.constant 7 : i32
    %449 = arith.addi %0, %c7_i32_170 : i32
    %450 = arith.index_cast %449 : i32 to index
    %451 = arith.index_cast %c6_i32_148 : i32 to index
    %452 = memref.load %arg1[%450, %451] : memref<8x8xi32, #tpu.memory_space<smem>>
    %453 = arith.index_cast %452 : i32 to index
    %c0_171 = arith.constant 0 : index
    %c0_172 = arith.constant 0 : index
    %454 = vector.load %arg4[%453, %c0_171, %c0_172] : memref<20x1x128xf32, #tpu.memory_space<vmem>>, vector<1x1x128xf32>
    %455 = vector.shape_cast %454 : vector<1x1x128xf32> to vector<1x128xf32>
    %456 = arith.addf %392, %455 : vector<1x128xf32>
    %c7_i32_173 = arith.constant 7 : i32
    %c0_i32_174 = arith.constant 0 : i32
    %457 = arith.addi %0, %c0_i32_174 : i32
    %458 = arith.index_cast %457 : i32 to index
    %459 = arith.index_cast %c7_i32_173 : i32 to index
    %460 = memref.load %arg1[%458, %459] : memref<8x8xi32, #tpu.memory_space<smem>>
    %461 = arith.index_cast %460 : i32 to index
    %c0_175 = arith.constant 0 : index
    %c0_176 = arith.constant 0 : index
    %462 = vector.load %arg4[%461, %c0_175, %c0_176] : memref<20x1x128xf32, #tpu.memory_space<vmem>>, vector<1x1x128xf32>
    %463 = vector.shape_cast %462 : vector<1x1x128xf32> to vector<1x128xf32>
    %464 = arith.addf %400, %463 : vector<1x128xf32>
    %c1_i32_177 = arith.constant 1 : i32
    %465 = arith.addi %0, %c1_i32_177 : i32
    %466 = arith.index_cast %465 : i32 to index
    %467 = arith.index_cast %c7_i32_173 : i32 to index
    %468 = memref.load %arg1[%466, %467] : memref<8x8xi32, #tpu.memory_space<smem>>
    %469 = arith.index_cast %468 : i32 to index
    %c0_178 = arith.constant 0 : index
    %c0_179 = arith.constant 0 : index
    %470 = vector.load %arg4[%469, %c0_178, %c0_179] : memref<20x1x128xf32, #tpu.memory_space<vmem>>, vector<1x1x128xf32>
    %471 = vector.shape_cast %470 : vector<1x1x128xf32> to vector<1x128xf32>
    %472 = arith.addf %408, %471 : vector<1x128xf32>
    %c2_i32_180 = arith.constant 2 : i32
    %473 = arith.addi %0, %c2_i32_180 : i32
    %474 = arith.index_cast %473 : i32 to index
    %475 = arith.index_cast %c7_i32_173 : i32 to index
    %476 = memref.load %arg1[%474, %475] : memref<8x8xi32, #tpu.memory_space<smem>>
    %477 = arith.index_cast %476 : i32 to index
    %c0_181 = arith.constant 0 : index
    %c0_182 = arith.constant 0 : index
    %478 = vector.load %arg4[%477, %c0_181, %c0_182] : memref<20x1x128xf32, #tpu.memory_space<vmem>>, vector<1x1x128xf32>
    %479 = vector.shape_cast %478 : vector<1x1x128xf32> to vector<1x128xf32>
    %480 = arith.addf %416, %479 : vector<1x128xf32>
    %c3_i32_183 = arith.constant 3 : i32
    %481 = arith.addi %0, %c3_i32_183 : i32
    %482 = arith.index_cast %481 : i32 to index
    %483 = arith.index_cast %c7_i32_173 : i32 to index
    %484 = memref.load %arg1[%482, %483] : memref<8x8xi32, #tpu.memory_space<smem>>
    %485 = arith.index_cast %484 : i32 to index
    %c0_184 = arith.constant 0 : index
    %c0_185 = arith.constant 0 : index
    %486 = vector.load %arg4[%485, %c0_184, %c0_185] : memref<20x1x128xf32, #tpu.memory_space<vmem>>, vector<1x1x128xf32>
    %487 = vector.shape_cast %486 : vector<1x1x128xf32> to vector<1x128xf32>
    %488 = arith.addf %424, %487 : vector<1x128xf32>
    %c4_i32_186 = arith.constant 4 : i32
    %489 = arith.addi %0, %c4_i32_186 : i32
    %490 = arith.index_cast %489 : i32 to index
    %491 = arith.index_cast %c7_i32_173 : i32 to index
    %492 = memref.load %arg1[%490, %491] : memref<8x8xi32, #tpu.memory_space<smem>>
    %493 = arith.index_cast %492 : i32 to index
    %c0_187 = arith.constant 0 : index
    %c0_188 = arith.constant 0 : index
    %494 = vector.load %arg4[%493, %c0_187, %c0_188] : memref<20x1x128xf32, #tpu.memory_space<vmem>>, vector<1x1x128xf32>
    %495 = vector.shape_cast %494 : vector<1x1x128xf32> to vector<1x128xf32>
    %496 = arith.addf %432, %495 : vector<1x128xf32>
    %c5_i32_189 = arith.constant 5 : i32
    %497 = arith.addi %0, %c5_i32_189 : i32
    %498 = arith.index_cast %497 : i32 to index
    %499 = arith.index_cast %c7_i32_173 : i32 to index
    %500 = memref.load %arg1[%498, %499] : memref<8x8xi32, #tpu.memory_space<smem>>
    %501 = arith.index_cast %500 : i32 to index
    %c0_190 = arith.constant 0 : index
    %c0_191 = arith.constant 0 : index
    %502 = vector.load %arg4[%501, %c0_190, %c0_191] : memref<20x1x128xf32, #tpu.memory_space<vmem>>, vector<1x1x128xf32>
    %503 = vector.shape_cast %502 : vector<1x1x128xf32> to vector<1x128xf32>
    %504 = arith.addf %440, %503 : vector<1x128xf32>
    %c6_i32_192 = arith.constant 6 : i32
    %505 = arith.addi %0, %c6_i32_192 : i32
    %506 = arith.index_cast %505 : i32 to index
    %507 = arith.index_cast %c7_i32_173 : i32 to index
    %508 = memref.load %arg1[%506, %507] : memref<8x8xi32, #tpu.memory_space<smem>>
    %509 = arith.index_cast %508 : i32 to index
    %c0_193 = arith.constant 0 : index
    %c0_194 = arith.constant 0 : index
    %510 = vector.load %arg4[%509, %c0_193, %c0_194] : memref<20x1x128xf32, #tpu.memory_space<vmem>>, vector<1x1x128xf32>
    %511 = vector.shape_cast %510 : vector<1x1x128xf32> to vector<1x128xf32>
    %512 = arith.addf %448, %511 : vector<1x128xf32>
    %c7_i32_195 = arith.constant 7 : i32
    %513 = arith.addi %0, %c7_i32_195 : i32
    %514 = arith.index_cast %513 : i32 to index
    %515 = arith.index_cast %c7_i32_173 : i32 to index
    %516 = memref.load %arg1[%514, %515] : memref<8x8xi32, #tpu.memory_space<smem>>
    %517 = arith.index_cast %516 : i32 to index
    %c0_196 = arith.constant 0 : index
    %c0_197 = arith.constant 0 : index
    %518 = vector.load %arg4[%517, %c0_196, %c0_197] : memref<20x1x128xf32, #tpu.memory_space<vmem>>, vector<1x1x128xf32>
    %519 = vector.shape_cast %518 : vector<1x1x128xf32> to vector<1x128xf32>
    %520 = arith.addf %456, %519 : vector<1x128xf32>
    %c8_i32_198 = arith.constant 8 : i32
    %c0_i32_199 = arith.constant 0 : i32
    %521 = arith.addi %0, %c0_i32_199 : i32
    %522 = arith.index_cast %521 : i32 to index
    %523 = memref.load %arg2[%522] : memref<8xf32, #tpu.memory_space<smem>>
    %524 = vector.broadcast %523 : f32 to vector<1x128xf32>
    %525 = arith.mulf %464, %524 : vector<1x128xf32>
    %c1_i32_200 = arith.constant 1 : i32
    %526 = arith.addi %0, %c1_i32_200 : i32
    %527 = arith.index_cast %526 : i32 to index
    %528 = memref.load %arg2[%527] : memref<8xf32, #tpu.memory_space<smem>>
    %529 = vector.broadcast %528 : f32 to vector<1x128xf32>
    %530 = arith.mulf %472, %529 : vector<1x128xf32>
    %c2_i32_201 = arith.constant 2 : i32
    %531 = arith.addi %0, %c2_i32_201 : i32
    %532 = arith.index_cast %531 : i32 to index
    %533 = memref.load %arg2[%532] : memref<8xf32, #tpu.memory_space<smem>>
    %534 = vector.broadcast %533 : f32 to vector<1x128xf32>
    %535 = arith.mulf %480, %534 : vector<1x128xf32>
    %c3_i32_202 = arith.constant 3 : i32
    %536 = arith.addi %0, %c3_i32_202 : i32
    %537 = arith.index_cast %536 : i32 to index
    %538 = memref.load %arg2[%537] : memref<8xf32, #tpu.memory_space<smem>>
    %539 = vector.broadcast %538 : f32 to vector<1x128xf32>
    %540 = arith.mulf %488, %539 : vector<1x128xf32>
    %c4_i32_203 = arith.constant 4 : i32
    %541 = arith.addi %0, %c4_i32_203 : i32
    %542 = arith.index_cast %541 : i32 to index
    %543 = memref.load %arg2[%542] : memref<8xf32, #tpu.memory_space<smem>>
    %544 = vector.broadcast %543 : f32 to vector<1x128xf32>
    %545 = arith.mulf %496, %544 : vector<1x128xf32>
    %c5_i32_204 = arith.constant 5 : i32
    %546 = arith.addi %0, %c5_i32_204 : i32
    %547 = arith.index_cast %546 : i32 to index
    %548 = memref.load %arg2[%547] : memref<8xf32, #tpu.memory_space<smem>>
    %549 = vector.broadcast %548 : f32 to vector<1x128xf32>
    %550 = arith.mulf %504, %549 : vector<1x128xf32>
    %c6_i32_205 = arith.constant 6 : i32
    %551 = arith.addi %0, %c6_i32_205 : i32
    %552 = arith.index_cast %551 : i32 to index
    %553 = memref.load %arg2[%552] : memref<8xf32, #tpu.memory_space<smem>>
    %554 = vector.broadcast %553 : f32 to vector<1x128xf32>
    %555 = arith.mulf %512, %554 : vector<1x128xf32>
    %c7_i32_206 = arith.constant 7 : i32
    %556 = arith.addi %0, %c7_i32_206 : i32
    %557 = arith.index_cast %556 : i32 to index
    %558 = memref.load %arg2[%557] : memref<8xf32, #tpu.memory_space<smem>>
    %559 = vector.broadcast %558 : f32 to vector<1x128xf32>
    %560 = arith.mulf %520, %559 : vector<1x128xf32>
    %561 = tpu.concatenate %525, %530, %535, %540, %545, %550, %555, %560 in 0 : vector<1x128xf32>, vector<1x128xf32>, vector<1x128xf32>, vector<1x128xf32>, vector<1x128xf32>, vector<1x128xf32>, vector<1x128xf32>, vector<1x128xf32> -> vector<8x128xf32>
    %c0_207 = arith.constant 0 : index
    %c0_208 = arith.constant 0 : index
    %562 = vector.load %arg3[%c0_207, %c0_208] : memref<1x128xf32, #tpu.memory_space<vmem>>, vector<1x128xf32>
    %563 = vector.broadcast %562 : vector<1x128xf32> to vector<8x128xf32>
    %564 = arith.addf %561, %563 : vector<8x128xf32>
    %c0_209 = arith.constant 0 : index
    %c0_210 = arith.constant 0 : index
    %565 = vector.load %arg5[%c0_209, %c0_210] : memref<8x128xf32, #tpu.memory_space<vmem>>, vector<8x128xf32>
    tpu.vector_store %arg5[%c0_209, %c0_210], %564 {strides = array<i32>} : memref<8x128xf32, #tpu.memory_space<vmem>>, vector<8x128xf32>,
    return
  }
  func.func @transform_0(%arg0: i32, %arg1: memref<8x8xi32, #tpu.memory_space<smem>>) -> i32 {
    %c0_i32 = arith.constant 0 : i32
    %c0_i32_0 = arith.constant 0 : i32
    return %c0_i32 : i32
  }
  func.func @transform_1(%arg0: i32, %arg1: memref<8x8xi32, #tpu.memory_space<smem>>) -> (i32, i32) {
    %c0_i32 = arith.constant 0 : i32
    %c0_i32_0 = arith.constant 0 : i32
    %c0_i32_1 = arith.constant 0 : i32
    return %c0_i32, %c0_i32_0 : i32, i32
  }
  func.func @transform_2(%arg0: i32, %arg1: memref<8x8xi32, #tpu.memory_space<smem>>) -> (i32, i32, i32) {
    %c0_i32 = arith.constant 0 : i32
    %c0_i32_0 = arith.constant 0 : i32
    %c0_i32_1 = arith.constant 0 : i32
    %c0_i32_2 = arith.constant 0 : i32
    return %c0_i32, %c0_i32_0, %c0_i32_1 : i32, i32, i32
  }
  func.func @transform_3(%arg0: i32, %arg1: memref<8x8xi32, #tpu.memory_space<smem>>) -> (i32, i32) {
    %c0_i32 = arith.constant 0 : i32
    %c0_i32_0 = arith.constant 0 : i32
    return %arg0, %c0_i32 : i32, i32
  }
}

</mosaic_0001>

<bundles_post_ra>
// kernel: tpu_custom_call.1
= control target key start
LH: loop header
LB: loop body
LE: loop exit
PB: predicated region body
PF: predicated region fallthrough
CT: control target
= control target key end

     0   :  { %s685_s18 = smov [#allocation3]   ;;  %s946_s0 = inlined_call_operand.hbm [shape: s32[8,8], index: 0, kind: input, shape index: {}]   ;;  %s947_s1 = inlined_call_operand.hbm [shape: f32[8], index: 1, kind: input, shape index: {}]   ;;  %s948_s2 = inlined_call_operand.vmem [shape: f32[1,128], index: 2, kind: input, shape index: {}]   ;;  %s949_s3 = inlined_call_operand.hbm [shape: f32[20,1,128], index: 3, kind: input, shape index: {}]   ;;  %s950_s4 = inlined_call_operand.hbm [shape: f32[8,128], index: 4, kind: output, shape index: {}]  }
   0x1   :  { %951 = sst [smem:[#allocation29_spill]] %s948_s2  ;;  %s10_s17 = sshll.u32 %s946_s0, 4  ;;  %s11_s17 = int_to_ptr.hbm [resolvable:$true] %s10_s17 }
   0x2   :  { %952 = sst [smem:[#allocation30_spill]] %s950_s4 }
   0x3   :  { %13 = dma.hbm_to_smem %s11_s17, 128, %s685_s18, [#allocation2] }
   0x4   :  { %677 = dma.done.wait [#allocation2], 128 }
   0x5   :  { %678 = vsyncadd [#allocation2], 4294967168 }
   0x6   :  { %16 = sfence }
   0x7   :  { %17 = vsyncpa [#allocation7], 0 }
   0x8   :  { %18 = vsyncpa [#allocation5], 0 }
   0x9   :  { %19 = vsyncpa [#allocation6], 0  ;;  %s25_s21 = sshll.u32 %s947_s1, 4  ;;  %s35_s24 = sshll.u32 %s949_s3, 4  ;;  %s26_s21 = int_to_ptr.hbm [resolvable:$true] %s25_s21  ;;  %s36_s24 = int_to_ptr.hbm [resolvable:$true] %s35_s24 }
   0xa   :  { %s686_s25 = smov [#allocation4]   ;;  %s687_s0 = smov [#allocation8]  }
   0xb   :  { %28 = dma.hbm_to_smem %s26_s21, 16, %s686_s25, [#allocation7]  }
   0xc   :  { %s37_s26 = sshll.u32 %s687_s0, 4  ;;  %s688_s27 = smov 16   ;;  %s38_s26 = int_to_ptr.vmem [resolvable:$true] %s37_s26 }
   0xd   :  { %s689_s28 = smov 1  }
   0xe   :  { %43 = dma.hbm_to_vmem [thread:$0]  %s36_s24, 320, %s38_s26, [#allocation5], %s688_s27, %s688_s27, %s689_s28  }
   0xf   :  { %679 = dma.done.wait [#allocation7], 16  }
  0x10   :  { %680 = vsyncadd [#allocation7], 4294967280 }
  0x11   :  { %681 = dma.done.wait [#allocation5], 320  }
  0x12   :  { %682 = vsyncadd [#allocation5], 4294966976 }
  0x13   :  { %52 = sfence }
  0x14   :  { %s725_s1 = sld [smem:[#allocation3]]  ;;  %vm426_vm0 = vcmask 1040384   ;;  %vm428_vm1 = vcmask 1041408   ;;  %vm430_vm2 = vcmask 1042432   ;;  %vm432_vm3 = vcmask 1043456  }
  0x15   :  { %s727_s29 = sld [smem:[#allocation3 + $0x80]]  ;;  %vm434_vm4 = vcmask 1044480   ;;  %vm436_vm5 = vcmask 1045504   ;;  %vm438_vm6 = vcmask 1046528  }
  0x16   :  { %s729_s30 = sld [smem:[#allocation3 + $0x100]] }
  0x17   :  { %s731_s3 = sld [smem:[#allocation3 + $0x180]] }
  0x18   :  { %s733_s5 = sld [smem:[#allocation3 + $0x200]] }
  0x19   :  { %s735_s6 = sld [smem:[#allocation3 + $0x280]] }
  0x1a   :  { %s737_s7 = sld [smem:[#allocation3 + $0x300]] }
  0x1b   :  { %s739_s8 = sld [smem:[#allocation3 + $0x380]] }
  0x1c   :  { %s741_s9 = sld [smem:[#allocation3 + $0x1]] }
  0x1d   :  { %s743_s10 = sld [smem:[#allocation3 + $0x81]] }
  0x1e   :  { %s745_s11 = sld [smem:[#allocation3 + $0x101]] }
  0x1f   :  { %s747_s12 = sld [smem:[#allocation3 + $0x181]] }
  0x20   :  { %s749_s13 = sld [smem:[#allocation3 + $0x201]] }
  0x21   :  { %s751_s14 = sld [smem:[#allocation3 + $0x281]] }
  0x22   :  { %s753_s15 = sld [smem:[#allocation3 + $0x301]] }
  0x23   :  { %s755_s16 = sld [smem:[#allocation3 + $0x381]] }
  0x24   :  { %s757_s17 = sld [smem:[#allocation3 + $0x2]] }
  0x25   :  { %s759_s18 = sld [smem:[#allocation3 + $0x82]] }
  0x26   :  { %s761_s19 = sld [smem:[#allocation3 + $0x102]] }
  0x27   :  { %s763_s20 = sld [smem:[#allocation3 + $0x182]] }
  0x28   :  { %s765_s21 = sld [smem:[#allocation3 + $0x202]] }
  0x29   :  { %s767_s22 = sld [smem:[#allocation3 + $0x282]] }
  0x2a   :  { %s769_s23 = sld [smem:[#allocation3 + $0x302]] }
  0x2b   :  { %s771_s24 = sld [smem:[#allocation3 + $0x382]] }
  0x2c   :  { %s773_s25 = sld [smem:[#allocation3 + $0x3]] }
  0x2d   :  { %s775_s0 = sld [smem:[#allocation3 + $0x83]] }
  0x2e   :  { %s777_s26 = sld [smem:[#allocation3 + $0x103]] }
  0x2f   :  { %s779_s27 = sld [smem:[#allocation3 + $0x183]] }
  0x30   :  { %953 = sst [smem:[#allocation14_spill]] %s769_s23 }
  0x31   :  { %954 = sst [smem:[#allocation15_spill]] %s771_s24 }
  0x32   :  { %955 = sst [smem:[#allocation16_spill]] %s773_s25 }
  0x33   :  { %956 = sst [smem:[#allocation17_spill]] %s775_s0 }
  0x34   :  { %957 = sst [smem:[#allocation18_spill]] %s777_s26 }
  0x35   :  { %958 = sst [smem:[#allocation19_spill]] %s779_s27 }
  0x36   :  { %s781_s28 = sld [smem:[#allocation3 + $0x203]] }
  0x37   :  { %s783_s4 = sld [smem:[#allocation3 + $0x283]] }
  0x38   :  { %s785_s2 = sld [smem:[#allocation3 + $0x303]] }
  0x39   :  { %s787_s23 = sld [smem:[#allocation3 + $0x383]] }
  0x3a   :  { %s789_s24 = sld [smem:[#allocation3 + $0x4]] }
  0x3b   :  { %s791_s25 = sld [smem:[#allocation3 + $0x84]] }
  0x3c   :  { %959 = sst [smem:[#allocation20_spill]] %s781_s28 }
  0x3d   :  { %960 = sst [smem:[#allocation21_spill]] %s783_s4 }
  0x3e   :  { %961 = sst [smem:[#allocation22_spill]] %s785_s2  ;;  %s56_s2 = scalar_lea.vmem [#allocation8], %s725_s1 }
  0x3f   :  { %962 = sst [smem:[#allocation23_spill]] %s787_s23  ;;  %v57_v0 = vld [vmem:[%s56_s2] sm:$0x1]  ;;  %s62_s23 = scalar_lea.vmem [#allocation8], %s727_s29 }
  0x40   :  { %963 = sst [smem:[#allocation24_spill]] %s789_s24  ;;  %v63_v1 = vld [vmem:[%s62_s23] sm:$0x1]  ;;  %s103_s24 = scalar_lea.vmem [#allocation8], %s741_s9 }
  0x41   :  { %964 = sst [smem:[#allocation25_spill]] %s791_s25  ;;  %v104_v2 = vld [vmem:[%s103_s24] sm:$0x1]  ;;  %s74_s2 = scalar_lea.vmem [#allocation8], %s731_s3 }
  0x42   :  { %s793_s0 = sld [smem:[#allocation3 + $0x104]]  ;;  %v75_v6 = vld [vmem:[%s74_s2] sm:$0x1]  ;;  %s118_s29 = scalar_lea.vmem [#allocation8], %s747_s12  ;;  %v105_v15 = vadd.f32 %v104_v2, %v57_v0 }
  0x43   :  { %s795_s26 = sld [smem:[#allocation3 + $0x184]]  ;;  %v119_v7 = vld [vmem:[%s118_s29] sm:$0x1]  ;;  %s123_s23 = scalar_lea.vmem [#allocation8], %s749_s13 }
  0x44   :  { %s797_s27 = sld [smem:[#allocation3 + $0x204]]  ;;  %v124_v9 = vld [vmem:[%s123_s23] sm:$0x1]  ;;  %s128_s24 = scalar_lea.vmem [#allocation8], %s751_s14  ;;  %v120_v23 = vadd.f32 %v119_v7, %v75_v6 }
  0x45   :  { %s799_s28 = sld [smem:[#allocation3 + $0x284]]  ;;  %v129_v11 = vld [vmem:[%s128_s24] sm:$0x1]  ;;  %s143_s3 = scalar_lea.vmem [#allocation8], %s757_s17 }
  0x46   :  { %s801_s4 = sld [smem:[#allocation3 + $0x304]]  ;;  %v144_v12 = vld [vmem:[%s143_s3] sm:$0x1]  ;;  %s148_s12 = scalar_lea.vmem [#allocation8], %s759_s18 }
  0x47   :  { %s807_s25 = sld [smem:[#allocation3 + $0x384]]  ;;  %v149_v13 = vld [vmem:[%s148_s12] sm:$0x1]  ;;  %s133_s13 = scalar_lea.vmem [#allocation8], %s753_s15  ;;  %v145_v30 = vadd.f32 %v144_v12, %v105_v15 }
  0x48   :  { %965 = sst [smem:[#allocation26_spill]] %s793_s0  ;;  %s108_s0 = scalar_lea.vmem [#allocation8], %s743_s10  ;;  %v134_v17 = vld [vmem:[%s133_s13] sm:$0x1] }
  0x49   :  { %v109_v3 = vld [vmem:[%s108_s0] sm:$0x1]  ;;  %s811_s1 = sld [smem:[#allocation3 + $0x5]]  ;;  %s80_s10 = scalar_lea.vmem [#allocation8], %s733_s5 }
  0x4a   :  { %966 = sst [smem:[#allocation27_spill]] %s797_s27  ;;  %s68_s27 = scalar_lea.vmem [#allocation8], %s729_s30  ;;  %v81_v8 = vld [vmem:[%s80_s10] sm:$0x1]  ;;  %v110_v16 = vadd.f32 %v109_v3, %v63_v1 }
  0x4b   :  { %967 = sst [smem:[#allocation28_spill]] %s799_s28  ;;  %v69_v4 = vld [vmem:[%s68_s27] sm:$0x1]  ;;  %s113_s28 = scalar_lea.vmem [#allocation8], %s745_s11  ;;  %v125_v25 = vadd.f32 %v124_v9, %v81_v8 }
  0x4c   :  { %v114_v5 = vld [vmem:[%s113_s28] sm:$0x1]  ;;  %s815_s9 = sld [smem:[#allocation3 + $0x85]]  ;;  %s86_s11 = scalar_lea.vmem [#allocation8], %s735_s6  ;;  %v150_v31 = vadd.f32 %v149_v13, %v110_v16 }
  0x4d   :  { %s819_s30 = sld [smem:[#allocation3 + $0x105]]  ;;  %v87_v10 = vld [vmem:[%s86_s11] sm:$0x1]  ;;  %s92_s5 = scalar_lea.vmem [#allocation8], %s737_s7  ;;  %v115_v20 = vadd.f32 %v114_v5, %v69_v4 }
  0x4e   :  { %s825_s0 = sld [smem:[#allocation3 + $0x185]]  ;;  %v93_v14 = vld [vmem:[%s92_s5] sm:$0x1]  ;;  %s153_s6 = scalar_lea.vmem [#allocation8], %s761_s19  ;;  %v130_v29 = vadd.f32 %v129_v11, %v87_v10 }
  0x4f   :  { %v154_v18 = vld [vmem:[%s153_s6] sm:$0x1]  ;;  %s830_s14 = sld [smem:[#allocation3 + $0x205]]  ;;  %s98_s27 = scalar_lea.vmem [#allocation8], %s739_s8  ;;  %v135_v34 = vadd.f32 %v134_v17, %v93_v14 }
  0x50   :  { %s968_s17 = sld [smem:[#allocation16_spill]]  ;;  %v99_v19 = vld [vmem:[%s98_s27] sm:$0x1]  ;;  %s138_s28 = scalar_lea.vmem [#allocation8], %s755_s16  ;;  %v155_v35 = vadd.f32 %v154_v18, %v115_v20 }
  0x51   :  { %s969_s18 = sld [smem:[#allocation17_spill]]  ;;  %v139_v21 = vld [vmem:[%s138_s28] sm:$0x1]  ;;  %s158_s2 = scalar_lea.vmem [#allocation8], %s763_s20 }
  0x52   :  { %v159_v22 = vld [vmem:[%s158_s2] sm:$0x1]  ;;  %s835_s7 = sld [smem:[#allocation3 + $0x285]]  ;;  %s163_s15 = scalar_lea.vmem [#allocation8], %s765_s21  ;;  %v140_v38 = vadd.f32 %v139_v21, %v99_v19 }
  0x53   :  { %s970_s29 = sld [smem:[#allocation14_spill]]  ;;  %v164_v24 = vld [vmem:[%s163_s15] sm:$0x1]  ;;  %s168_s23 = scalar_lea.vmem [#allocation8], %s767_s22  ;;  %v160_v39 = vadd.f32 %v159_v22, %v120_v23 }
  0x54   :  { %s971_s10 = sld [smem:[#allocation18_spill]]  ;;  %v169_v26 = vld [vmem:[%s168_s23] sm:$0x1]  ;;  %v165_v41 = vadd.f32 %v164_v24, %v125_v25 }
  0x55   :  { %s838_s19 = sld [smem:[#allocation3 + $0x305]]  ;;  %v170_v45 = vadd.f32 %v169_v26, %v130_v29 }
  0x56   :  { %s972_s8 = sld [smem:[#allocation15_spill]]  ;;  %s183_s11 = scalar_lea.vmem [#allocation8], %s968_s17 }
  0x57   :  { %v184_v27 = vld [vmem:[%s183_s11] sm:$0x1]  ;;  %s973_s24 = sld [smem:[#allocation19_spill]]  ;;  %s188_s16 = scalar_lea.vmem [#allocation8], %s969_s18 }
  0x58   :  { %v189_v28 = vld [vmem:[%s188_s16] sm:$0x1]  ;;  %s843_s20 = sld [smem:[#allocation3 + $0x385]]  ;;  %v185_v46 = vadd.f32 %v184_v27, %v145_v30 }
  0x59   :  { %s974_s3 = sld [smem:[#allocation20_spill]]  ;;  %s173_s21 = scalar_lea.vmem [#allocation8], %s970_s29  ;;  %v190_v47 = vadd.f32 %v189_v28, %v150_v31 }
  0x5a   :  { %v174_v32 = vld [vmem:[%s173_s21] sm:$0x1]  ;;  %s193_s12 = scalar_lea.vmem [#allocation8], %s971_s10  ;;  %s975_s5 = sld [smem:[#allocation21_spill]] }
  0x5b   :  { %v194_v33 = vld [vmem:[%s193_s12] sm:$0x1]  ;;  %s847_s13 = sld [smem:[#allocation3 + $0x6]]  ;;  %v175_v50 = vadd.f32 %v174_v32, %v135_v34 }
  0x5c   :  { %s976_s22 = sld [smem:[#allocation24_spill]]  ;;  %s178_s17 = scalar_lea.vmem [#allocation8], %s972_s8  ;;  %v195_v51 = vadd.f32 %v194_v33, %v155_v35 }
  0x5d   :  { %s977_s6 = sld [smem:[#allocation25_spill]]  ;;  %v179_v36 = vld [vmem:[%s178_s17] sm:$0x1]  ;;  %s198_s27 = scalar_lea.vmem [#allocation8], %s973_s24 }
  0x5e   :  { %v199_v37 = vld [vmem:[%s198_s27] sm:$0x1]  ;;  %s851_s18 = sld [smem:[#allocation3 + $0x86]]  ;;  %v180_v54 = vadd.f32 %v179_v36, %v140_v38 }
  0x5f   :  { %s978_s28 = sld [smem:[#allocation22_spill]]  ;;  %s203_s2 = scalar_lea.vmem [#allocation8], %s974_s3  ;;  %v200_v55 = vadd.f32 %v199_v37, %v160_v39 }
  0x60   :  { %s979_s29 = sld [smem:[#allocation26_spill]]  ;;  %v204_v40 = vld [vmem:[%s203_s2] sm:$0x1]  ;;  %s208_s10 = scalar_lea.vmem [#allocation8], %s975_s5 }
  0x61   :  { %s854_s15 = sld [smem:[#allocation3 + $0x106]]  ;;  %v209_v42 = vld [vmem:[%s208_s10] sm:$0x1]  ;;  %v205_v57 = vadd.f32 %v204_v40, %v165_v41  ;;  %s268_s10 = scalar_lea.vmem [#allocation8], %s815_s9 }
  0x62   :  { %s980_s23 = sld [smem:[#allocation23_spill]]  ;;  %s223_s11 = scalar_lea.vmem [#allocation8], %s976_s22  ;;  %v269_v60 = vld [vmem:[%s268_s10] sm:$0x1]  ;;  %v210_v61 = vadd.f32 %v209_v42, %v170_v45 }
  0x63   :  { %v224_v43 = vld [vmem:[%s223_s11] sm:$0x1]  ;;  %s228_s8 = scalar_lea.vmem [#allocation8], %s977_s6  ;;  %s859_s24 = sld [smem:[#allocation3 + $0x186]] }
  0x64   :  { %v229_v44 = vld [vmem:[%s228_s8] sm:$0x1]  ;;  %s981_s16 = sld [smem:[#allocation27_spill]]  ;;  %s238_s22 = scalar_lea.vmem [#allocation8], %s795_s26  ;;  %v225_v62 = vadd.f32 %v224_v43, %v185_v46 }
  0x65   :  { %s213_s3 = scalar_lea.vmem [#allocation8], %s978_s28  ;;  %s982_s12 = sld [smem:[#allocation28_spill]]  ;;  %v239_v53 = vld [vmem:[%s238_s22] sm:$0x1]  ;;  %v230_v63 = vadd.f32 %v229_v44, %v190_v47 }
  0x66   :  { %v214_v48 = vld [vmem:[%s213_s3] sm:$0x1]  ;;  %s233_s21 = scalar_lea.vmem [#allocation8], %s979_s29  ;;  %s863_s17 = sld [smem:[#allocation3 + $0x206]]  ;;  %v240_v7 = vadd.f32 %v239_v53, %v200_v55 }
  0x67   :  { %v234_v49 = vld [vmem:[%s233_s21] sm:$0x1]  ;;  %s867_s6 = sld [smem:[#allocation3 + $0x286]]  ;;  %s263_s29 = scalar_lea.vmem [#allocation8], %s811_s1  ;;  %v215_v2 = vadd.f32 %v214_v48, %v175_v50  ;;  %v270_v15 = vadd.f32 %v269_v60, %v230_v63 }
  0x68   :  { %s218_s5 = scalar_lea.vmem [#allocation8], %s980_s23  ;;  %s870_s28 = sld [smem:[#allocation3 + $0x306]]  ;;  %v264_v59 = vld [vmem:[%s263_s29] sm:$0x1]  ;;  %v235_v3 = vadd.f32 %v234_v49, %v195_v51 }
  0x69   :  { %v219_v52 = vld [vmem:[%s218_s5] sm:$0x1]  ;;  %s875_s26 = sld [smem:[#allocation3 + $0x386]]  ;;  %s253_s23 = scalar_lea.vmem [#allocation8], %s801_s4  ;;  %v265_v14 = vadd.f32 %v264_v59, %v225_v62 }
  0x6a   :  { %s243_s27 = scalar_lea.vmem [#allocation8], %s981_s16  ;;  %v254_v0 = vld [vmem:[%s253_s23] sm:$0x1]  ;;  %s273_s11 = scalar_lea.vmem [#allocation8], %s819_s30  ;;  %v220_v6 = vadd.f32 %v219_v52, %v180_v54 }
  0x6b   :  { %v244_v56 = vld [vmem:[%s243_s27] sm:$0x1]  ;;  %s248_s2 = scalar_lea.vmem [#allocation8], %s982_s12  ;;  %s879_s8 = sld [smem:[#allocation3 + $0x7]]  ;;  %v255_v18 = vadd.f32 %v254_v0, %v215_v2 }
  0x6c   :  { %v249_v58 = vld [vmem:[%s248_s2] sm:$0x1]  ;;  %s258_s1 = scalar_lea.vmem [#allocation8], %s807_s25  ;;  %s278_s9 = scalar_lea.vmem [#allocation8], %s825_s0  ;;  %v245_v9 = vadd.f32 %v244_v56, %v205_v57 }
  0x6d   :  { %v274_v1 = vld [vmem:[%s273_s11] sm:$0x1]  ;;  %s883_s16 = sld [smem:[#allocation3 + $0x87]]  ;;  %s283_s4 = scalar_lea.vmem [#allocation8], %s830_s14  ;;  %v250_v13 = vadd.f32 %v249_v58, %v210_v61 }
  0x6e   :  { %v259_v4 = vld [vmem:[%s258_s1] sm:$0x1]  ;;  %s886_s30 = sld [smem:[#allocation3 + $0x107]]  ;;  %s288_s3 = scalar_lea.vmem [#allocation8], %s835_s7  ;;  %v275_v19 = vadd.f32 %v274_v1, %v235_v3 }
  0x6f   :  { %v279_v5 = vld [vmem:[%s278_s9] sm:$0x1]  ;;  %s303_s21 = scalar_lea.vmem [#allocation8], %s847_s13  ;;  %s308_s25 = scalar_lea.vmem [#allocation8], %s851_s18  ;;  %v260_v22 = vadd.f32 %v259_v4, %v220_v6 }
  0x70   :  { %v284_v8 = vld [vmem:[%s283_s4] sm:$0x1]  ;;  %s891_s0 = sld [smem:[#allocation3 + $0x187]]  ;;  %s293_s14 = scalar_lea.vmem [#allocation8], %s838_s19  ;;  %v280_v23 = vadd.f32 %v279_v5, %v240_v7 }
  0x71   :  { %v289_v10 = vld [vmem:[%s288_s3] sm:$0x1]  ;;  %s313_s12 = scalar_lea.vmem [#allocation8], %s854_s15  ;;  %s895_s5 = sld [smem:[#allocation3 + $0x207]]  ;;  %v285_v25 = vadd.f32 %v284_v8, %v245_v9 }
  0x72   :  { %v304_v11 = vld [vmem:[%s303_s21] sm:$0x1]  ;;  %s298_s7 = scalar_lea.vmem [#allocation8], %s843_s20  ;;  %s318_s13 = scalar_lea.vmem [#allocation8], %s859_s24  ;;  %v290_v27 = vadd.f32 %v289_v10, %v250_v13 }
  0x73   :  { %v309_v12 = vld [vmem:[%s308_s25] sm:$0x1]  ;;  %s899_s18 = sld [smem:[#allocation3 + $0x287]]  ;;  %s323_s22 = scalar_lea.vmem [#allocation8], %s863_s17  ;;  %v305_v28 = vadd.f32 %v304_v11, %v265_v14 }
  0x74   :  { %v294_v16 = vld [vmem:[%s293_s14] sm:$0x1]  ;;  %s902_s19 = sld [smem:[#allocation3 + $0x307]]  ;;  %s328_s15 = scalar_lea.vmem [#allocation8], %s867_s6  ;;  %v310_v29 = vadd.f32 %v309_v12, %v270_v15 }
  0x75   :  { %v314_v17 = vld [vmem:[%s313_s12] sm:$0x1]  ;;  %s905_s27 = sld [smem:[#allocation3 + $0x387]]  ;;  %s333_s20 = scalar_lea.vmem [#allocation8], %s870_s28  ;;  %v295_v32 = vadd.f32 %v294_v16, %v255_v18 }
  0x76   :  { %v299_v20 = vld [vmem:[%s298_s7] sm:$0x1]  ;;  %s343_s24 = scalar_lea.vmem [#allocation8], %s879_s8  ;;  %s909_s17 = sld [smem:[#allocation4]]  ;;  %v315_v33 = vadd.f32 %v314_v17, %v275_v19 }
  0x77   :  { %v319_v21 = vld [vmem:[%s318_s13] sm:$0x1]  ;;  %s338_s2 = scalar_lea.vmem [#allocation8], %s875_s26  ;;  %s348_s6 = scalar_lea.vmem [#allocation8], %s883_s16  ;;  %v300_v36 = vadd.f32 %v299_v20, %v260_v22 }
  0x78   :  { %v324_v24 = vld [vmem:[%s323_s22] sm:$0x1]  ;;  %s913_s29 = sld [smem:[#allocation4 + $0x1]]  ;;  %v320_v37 = vadd.f32 %v319_v21, %v280_v23  ;;  %s353_s10 = scalar_lea.vmem [#allocation8], %s886_s30 }
  0x79   :  { %v329_v26 = vld [vmem:[%s328_s15] sm:$0x1]  ;;  %s916_s28 = sld [smem:[#allocation4 + $0x2]]  ;;  %v325_v39 = vadd.f32 %v324_v24, %v285_v25  ;;  %s358_s23 = scalar_lea.vmem [#allocation8], %s891_s0 }
  0x7a   :  { %v334_v30 = vld [vmem:[%s333_s20] sm:$0x1]  ;;  %s919_s11 = sld [smem:[#allocation4 + $0x3]]  ;;  %v330_v41 = vadd.f32 %v329_v26, %v290_v27  ;;  %s363_s26 = scalar_lea.vmem [#allocation8], %s895_s5 }
  0x7b   :  { %v344_v31 = vld [vmem:[%s343_s24] sm:$0x1]  ;;  %s922_s8 = sld [smem:[#allocation4 + $0x4]]  ;;  %v335_v45 = vadd.f32 %v334_v30, %v295_v32  ;;  %s368_s1 = scalar_lea.vmem [#allocation8], %s899_s18 }
  0x7c   :  { %v339_v34 = vld [vmem:[%s338_s2] sm:$0x1]  ;;  %v345_v42 = vadd.f32 %v344_v31, %v305_v28  ;;  %s925_s9 = sld [smem:[#allocation4 + $0x5]]  ;;  %s373_s16 = scalar_lea.vmem [#allocation8], %s902_s19  ;;  %v382_v51 = vstv %s909_s17 }
  0x7d   :  { %v349_v35 = vld [vmem:[%s348_s6] sm:$0x1]  ;;  %v340_v48 = vadd.f32 %v339_v34, %v300_v36  ;;  %s596_s4 = sld [smem:[#allocation4 + $0x6]]  ;;  %s378_s30 = scalar_lea.vmem [#allocation8], %s905_s27 }
  0x7e   :  { %v354_v38 = vld [vmem:[%s353_s10] sm:$0x1]  ;;  %v350_v43 = vadd.f32 %v349_v35, %v310_v29  ;;  %v385_v54 = vstv %s913_s29  ;;  %s597_s3 = sld [smem:[#allocation4 + $0x7]]  ;;  %v383_v56 = vmul.f32 %v382_v51, %v345_v42  ;;  %s690_s14 = smov [#allocation9]  }
  0x7f   :  { %v359_v40 = vld [vmem:[%s358_s23] sm:$0x1]  ;;  %v355_v46 = vadd.f32 %v354_v38, %v315_v33  ;;  %v388_v58 = vstv %s916_s28  ;;  %s983_s0 = sld [smem:[#allocation29_spill]]  ;;  %s451_s12 = sshll.u32 %s690_s14, 4  ;;  %s452_s12 = int_to_ptr.vmem [resolvable:$true] %s451_s12 }
  0x80   :  { %v364_v44 = vld [vmem:[%s363_s26] sm:$0x1]  ;;  %v360_v49 = vadd.f32 %v359_v40, %v320_v37  ;;  %v386_v57 = vmul.f32 %v385_v54, %v350_v43  ;;  %v391_v61 = vstv %s919_s11  ;;  %s984_s13 = sld [smem:[#allocation30_spill]] }
  0x81   :  { %v369_v47 = vld [vmem:[%s368_s1] sm:$0x1]  ;;  %v365_v52 = vadd.f32 %v364_v44, %v325_v39  ;;  %v389_v60 = vmul.f32 %v388_v58, %v355_v46  ;;  %v394_v0 = vstv %s922_s8 }
  0x82   :  { %v374_v50 = vld [vmem:[%s373_s16] sm:$0x1]  ;;  %v370_v55 = vadd.f32 %v369_v47, %v330_v41  ;;  %v392_v63 = vmul.f32 %v391_v61, %v360_v49  ;;  %v406_v1 = vperm.slane %v386_v57, 0  ;;  %v397_v3 = vstv %s925_s9 }
  0x83   :  { %v379_v53 = vld [vmem:[%s378_s30] sm:$0x1]  ;;  %v375_v59 = vadd.f32 %v374_v50, %v335_v45  ;;  %v395_v2 = vmul.f32 %v394_v0, %v365_v52  ;;  %v409_v4 = vperm.slane %v389_v60, 0  ;;  %v400_v6 = vstv %s596_s4 }
  0x84   :  { %v380_v62 = vadd.f32 %v379_v53, %v340_v48  ;;  %v398_v5 = vmul.f32 %v397_v3, %v370_v55  ;;  %v412_v7 = vperm.slane %v392_v63, 0  ;;  %v427_v8 = vsel %vm426_vm0, %v383_v56, %v406_v1 }
  0x85   :  { %v401_v9 = vmul.f32 %v400_v6, %v375_v59  ;;  %v403_v10 = vstv %s597_s3  ;;  %v415_v11 = vperm.slane %v395_v2, 0  ;;  %v429_v12 = vsel %vm428_vm1, %v427_v8, %v409_v4  ;;  %v604_v18 = vld [vmem:[%s983_s0] ss:$0 sm:$0xff] }
  0x86   :  { %v404_v13 = vmul.f32 %v403_v10, %v380_v62  ;;  %v418_v14 = vperm.slane %v398_v5, 0  ;;  %v431_v15 = vsel %vm430_vm2, %v429_v12, %v412_v7  ;;  %s453_s18 = sshll.u32 %s984_s13, 4  ;;  %s454_s18 = int_to_ptr.hbm [resolvable:$true] %s453_s18 }
  0x87   :  { %v421_v16 = vperm.slane %v401_v9, 0  ;;  %v433_v17 = vsel %vm432_vm3, %v431_v15, %v415_v11 }
  0x88   :  { %v424_v19 = vperm.slane %v404_v13, 0  ;;  %v435_v20 = vsel %vm434_vm4, %v433_v17, %v418_v14 }
  0x89   :  { %v437_v21 = vsel %vm436_vm5, %v435_v20, %v421_v16 }
  0x8a   :  { %v439_v22 = vsel %vm438_vm6, %v437_v21, %v424_v19 }
  0x8b   :  { %v444_v23 = vadd.f32 %v604_v18, %v439_v22 }
  0x8d   :  { %445 = vst [vmem:[#allocation9] sm:$0xff] %v444_v23 }
  0x8e   :  { %456 = dma.vmem_to_hbm [thread:$0]  %s452_s12, 128, %s454_s18, [#allocation6]  }
  0x8f   :  { %683 = dma.done.wait [#allocation6], 128  }
  0x90   :  { %684 = vsyncadd [#allocation6], 4294967168 }
  0x91   :  { %461 = vsyncpa [#allocation5], 1 }
  0x92   :  { %462 = vsyncpa [#allocation6], 1 }
  0x93   :  { %463 = vsyncpa [#allocation7], 1 }

</bundles_post_ra>
